<compile_context>
chip_gen: v7x
topology: tpu7x:2x2x1
jax: 0.10.0
libtpu: 0.0.40
codegen_flags: <defaults>
</compile_context>

<pallas_src>
import functools

import numpy as np

import jax
import jax.numpy as jnp
from jax import lax
from jax.experimental import pallas as pl
from jax.experimental.pallas import tpu as pltpu


# Tap enumeration shared by the kernel, the masks and the weight packer.
_TAPS = tuple((dh, dw) for dh in (-1, 0, 1) for dw in (-1, 0, 1))


# ---------------- host-side constant packing ----------------
def _build_phase_conv3x3_weight(k, nin, nout):
    """Pack an OIHW (nout, nin, 3, 3) kernel into the phase-domain matmul weight.

    Output phase (a,b) of a 3x3 conv applied to a 2x-upsampled image decomposes into taps on
    the 4 input phase planes shifted by (sh, sw) in {-1,0,1} at (H, W) resolution:
        row 2h+a+dh = 2*(h+sh) + pr  with  pr = (a+dh) % 2,  sh = (a+dh-pr)//2   (same for cols)
    Result shape: (4*nout, 9*4*nin); column index = t*(4*nin) + (pr*2+pc)*nin + c.
    """
    k = np.asarray(k, np.float32)
    R = 4 * nin
    w = np.zeros((4 * nout, 9 * R), np.float32)
    for a in range(2):
        for b in range(2):
            for dh in (-1, 0, 1):
                for dw in (-1, 0, 1):
                    pr = (a + dh) % 2
                    sh = (a + dh - pr) // 2
                    pc = (b + dw) % 2
                    sw = (b + dw - pc) // 2
                    t = _TAPS.index((sh, sw))
                    for o in range(nout):
                        row = (a * 2 + b) * nout + o
                        for c in range(nin):
                            col = t * R + (pr * 2 + pc) * nin + c
                            w[row, col] = k[o, c, dh + 1, dw + 1]
    return w


def _build_block_diag_1x1(wb, nin, nout):
    """1x1 conv is phase-preserving -> block-diagonal (4*nout, 4*nin) matmul weight."""
    wb = np.asarray(wb, np.float32).reshape(nout, nin)
    out = np.zeros((4 * nout, 4 * nin), np.float32)
    for k in range(4):
        out[k * nout:(k + 1) * nout, k * nin:(k + 1) * nin] = wb
    return out


def _build_edge_masks(H, W, NB):
    """(9, NB*H*W) 0/1 masks: valid iff (h+dh, w+dw) stays inside the (H, W) image."""
    hh = np.arange(H)[:, None]
    ww = np.arange(W)[None, :]
    m = np.zeros((9, H * W), np.float32)
    for t, (dh, dw) in enumerate(_TAPS):
        valid = (hh + dh >= 0) & (hh + dh < H) & (ww + dw >= 0) & (ww + dw < W)
        m[t] = valid.astype(np.float32).reshape(-1)
    return np.tile(m, (1, NB))


# ---------------- fused kernel ----------------
def _fused_kernel(x_ref, wup_ref, bup_ref, w1_ref, b1_ref, w2_ref, b2bb_ref,
                  wb_ref, masks_ref, o_ref, *, L, shifts):
    f32 = jnp.float32
    hi = lax.Precision.HIGHEST

    X = x_ref[...]                                   # (Cin, L)   lane axis = pixels
    masks = masks_ref[...]                           # (9, L)     precomputed edge masks

    # ConvTranspose2d(k=2, s=2) in phase domain: one MXU matmul -> (4*Cm, L).
    ph = jnp.dot(wup_ref[...], X, preferred_element_type=f32, precision=hi)
    ph = ph + bup_ref[...]

    # Mish(x) = x * t/(t+2),  t = e*(e+2),  e = exp(min(x, 20)); exact and overflow-safe.
    e = jnp.exp(jnp.minimum(ph, 20.0))
    t = e * (e + 2.0)
    m = ph * (t / (t + 2.0))                         # (4*Cm, L): phase planes of mish(up(x))

    # 1x1 bottleneck (phase-preserving block-diagonal matmul) computed early so `m`'s live
    # range ends right after the first tap stack.
    bneck = jnp.dot(wb_ref[...], m, preferred_element_type=f32, precision=hi)   # (4*Cout, L)

    def tap_stack(planes):
        # planes: (R, L) phase planes -> (9*R, L) of spatially shifted, zero-padded copies.
        blocks = []
        for t_idx, s in enumerate(shifts):
            if s == 0:
                blocks.append(planes)
            else:
                rolled = pltpu.roll(planes, shift=(-s) % L, axis=1)    # XLU, co-issues
                blocks.append(rolled * masks[t_idx:t_idx + 1, :])      # zero the wrapped edges
        return jnp.concatenate(blocks, axis=0)

    # conv1 3x3 (Cm -> 2*Cm) + ReLU, phase domain, MXU.
    y1 = jnp.dot(w1_ref[...], tap_stack(m), preferred_element_type=f32, precision=hi)
    y1 = jnp.maximum(y1 + b1_ref[...], 0.0)          # (4*C2, L)

    # conv2 3x3 (2*Cm -> Cout) + bottleneck + folded (b2 + bb) bias + final ReLU.
    y2 = jnp.dot(w2_ref[...], tap_stack(y1), preferred_element_type=f32, precision=hi)
    o_ref[...] = jnp.maximum(y2 + bneck + b2bb_ref[...], 0.0)          # (4*Cout, L)


# ---------------- wrapper ----------------
def features_upsample_forward(x, p, *, batch_block=1):
    """x: (N, in_ch, H, W) float32 NCHW -> (N, out_ch, 2H, 2W) float32 NCHW."""
    N, Cin, H, W = x.shape
    Cm = p["up_w"].shape[1]      # in_ch // 2
    C2 = p["w1"].shape[0]        # 2 * Cm
    Cout = p["w2"].shape[0]
    HW = H * W
    NB = batch_block
    assert N % NB == 0
    L = NB * HW
    assert L % 128 == 0, "lane-dense layout wants NB*H*W to be a multiple of 128"
    # For production H*W, additionally tile the lane axis in row blocks (1-row halo handled by
    # the same edge masks) and raise vmem_limit_bytes per generation; unnecessary at these sizes.

    # Lane-dense input slab: channels on sublanes, flattened (batch, h, w) on lanes.
    x2d = jnp.transpose(x, (1, 0, 2, 3)).reshape(Cin, N * HW)

    # Precomputed constants (fetched once; constant index_map => no per-step DMA / rebuild).
    wup = jnp.transpose(p["up_w"], (2, 3, 1, 0)).reshape(4 * Cm, Cin)   # rows = (kh*2+kw)*Cm + c
    w1b = jnp.asarray(_build_phase_conv3x3_weight(p["w1"], Cm, C2))     # (4*C2, 9*4*Cm)
    w2b = jnp.asarray(_build_phase_conv3x3_weight(p["w2"], C2, Cout))   # (4*Cout, 9*4*C2)
    wbb = jnp.asarray(_build_block_diag_1x1(p["wb"], Cm, Cout))         # (4*Cout, 4*Cm)
    masks = jnp.asarray(_build_edge_masks(H, W, NB))                    # (9, L)

    bup = jnp.tile(p["up_b"], 4).reshape(4 * Cm, 1)
    b1 = jnp.tile(p["b1"], 4).reshape(4 * C2, 1)
    b2bb = jnp.tile(p["b2"] + p["bb"], 4).reshape(4 * Cout, 1)

    shifts = tuple(dh * W + dw for dh, dw in _TAPS)
    kernel = functools.partial(_fused_kernel, L=L, shifts=shifts)

    def const(shape):
        return pl.BlockSpec(shape, lambda n: (0, 0))

    out2d = pl.pallas_call(
        kernel,
        out_shape=jax.ShapeDtypeStruct((4 * Cout, N * HW), jnp.float32),
        grid=(N // NB,),
        in_specs=[
            pl.BlockSpec((Cin, L), lambda n: (0, n)),   # batch block folded into lane axis
            const(wup.shape), const(bup.shape),
            const(w1b.shape), const(b1.shape),
            const(w2b.shape), const(b2bb.shape),
            const(wbb.shape), const(masks.shape),
        ],
        out_specs=pl.BlockSpec((4 * Cout, L), lambda n: (0, n)),
        compiler_params=pltpu.CompilerParams(
            dimension_semantics=("parallel",)),          # batch blocks independent -> 2 TCs on v7x
    )(x2d, wup, bup, w1b, b1, w2b, b2bb, wbb, masks)

    # De-interleave the 4 output phases: (4*Cout, N*HW) -> (N, Cout, 2H, 2W). Layout plumbing.
    out = out2d.reshape(2, 2, Cout, N, H, W).transpose(3, 2, 4, 0, 5, 1)
    return out.reshape(N, Cout, 2 * H, 2 * W)


# ---------------- pure-JAX reference (independent check of semantics) ----------------
def _mish(x):
    return x * jnp.tanh(jax.nn.softplus(x))


def _conv_nchw(x, w, b, pad):
    out = lax.conv_general_dilated(
        x, w, window_strides=(1, 1), padding=((pad, pad), (pad, pad)),
        dimension_numbers=("NCHW", "OIHW", "NCHW"),
        precision=lax.Precision.HIGHEST)
    return out + b[None, :, None, None]


def reference_forward(x, p):
    N, Cin, H, W = x.shape
    Cm = p["up_w"].shape[1]
    # ConvTranspose2d(k=2, s=2): out[n,co,2h+kh,2w+kw] = sum_ci x[n,ci,h,w]*W[ci,co,kh,kw] + b
    tmp = jnp.einsum("nihw,iokl->nohwkl", x, p["up_w"], precision=lax.Precision.HIGHEST)
    y = tmp.transpose(0, 1, 2, 4, 3, 5).reshape(N, Cm, 2 * H, 2 * W)
    y = y + p["up_b"][None, :, None, None]
    y = _mish(y)
    t = jax.nn.relu(_conv_nchw(y, p["w1"], p["b1"], 1))
    t = _conv_nchw(t, p["w2"], p["b2"], 1)
    hx = _conv_nchw(y, p["wb"], p["bb"], 0)
    return jax.nn.relu(hx + t)


def init_params(key, in_ch, out_ch):
    Cm = in_ch // 2
    ks = jax.random.split(key, 8)

    def u(k, shape, fan_in):
        s = 1.0 / float(fan_in) ** 0.5
        return jax.random.uniform(k, shape, jnp.float32, -s, s)

    return {
        "up_w": u(ks[0], (in_ch, Cm, 2, 2), in_ch * 4),      # ConvTranspose2d weight (Cin, Cout, kH, kW)
        "up_b": u(ks[1], (Cm,), in_ch * 4),
        "w1":   u(ks[2], (2 * Cm, Cm, 3, 3), Cm * 9),        # Conv2d weight (Cout, Cin, kH, kW)
        "b1":   u(ks[3], (2 * Cm,), Cm * 9),
        "w2":   u(ks[4], (out_ch, 2 * Cm, 3, 3), 2 * Cm * 9),
        "b2":   u(ks[5], (out_ch,), 2 * Cm * 9),
        "wb":   u(ks[6], (out_ch, Cm, 1, 1), Cm),
        "bb":   u(ks[7], (out_ch,), Cm),
    }


if __name__ == "__main__":
    key = jax.random.PRNGKey(0)
    kx, kp = jax.random.split(key)
    N, in_ch, out_ch, H, W = 2, 4, 4, 16, 16

    x = jax.random.normal(kx, (N, in_ch, H, W), jnp.float32)
    params = init_params(kp, in_ch, out_ch)

    out = features_upsample_forward(x, params)
    out = jax.block_until_ready(out)

    ref = reference_forward(x, params)
    assert out.shape == ref.shape == (N, out_ch, 2 * H, 2 * W)
    max_err = float(jnp.max(jnp.abs(out - ref)))
    assert jnp.allclose(out, ref, atol=2e-4, rtol=2e-4), max_err
    print("KERNEL_OK")
</pallas_src>

<mosaic_0001>
module attributes {stable_mosaic.version = 11 : i64} {
  func.func @_fused_kernel(%arg0: i32, %arg1: memref<4x256xf32, #tpu.memory_space<vmem>>, %arg2: memref<8x4xf32, #tpu.memory_space<vmem>>, %arg3: memref<8x1xf32, #tpu.memory_space<vmem>>, %arg4: memref<16x72xf32, #tpu.memory_space<vmem>>, %arg5: memref<16x1xf32, #tpu.memory_space<vmem>>, %arg6: memref<16x144xf32, #tpu.memory_space<vmem>>, %arg7: memref<16x1xf32, #tpu.memory_space<vmem>>, %arg8: memref<16x8xf32, #tpu.memory_space<vmem>>, %arg9: memref<9x256xf32, #tpu.memory_space<vmem>>, %arg10: memref<16x256xf32, #tpu.memory_space<vmem>>) attributes {dimension_semantics = [#tpu.dimension_semantics<parallel>], iteration_bounds = array<i64: 2>, scalar_prefetch = 0 : i64, scratch_operands = 0 : i64, tpu.core_type = #tpu.core_type<tc>, window_params = [{transform_indices = @transform_0, window_bounds = array<i64: 4, 256>}, {pipeline_mode = #tpu.pipeline_mode<synchronous>, transform_indices = @transform_1, window_bounds = array<i64: 8, 4>}, {pipeline_mode = #tpu.pipeline_mode<synchronous>, transform_indices = @transform_2, window_bounds = array<i64: 8, 1>}, {pipeline_mode = #tpu.pipeline_mode<synchronous>, transform_indices = @transform_3, window_bounds = array<i64: 16, 72>}, {pipeline_mode = #tpu.pipeline_mode<synchronous>, transform_indices = @transform_4, window_bounds = array<i64: 16, 1>}, {pipeline_mode = #tpu.pipeline_mode<synchronous>, transform_indices = @transform_5, window_bounds = array<i64: 16, 144>}, {pipeline_mode = #tpu.pipeline_mode<synchronous>, transform_indices = @transform_6, window_bounds = array<i64: 16, 1>}, {pipeline_mode = #tpu.pipeline_mode<synchronous>, transform_indices = @transform_7, window_bounds = array<i64: 16, 8>}, {pipeline_mode = #tpu.pipeline_mode<synchronous>, transform_indices = @transform_8, window_bounds = array<i64: 9, 256>}, {transform_indices = @transform_9, window_bounds = array<i64: 16, 256>}]} {
    %c0 = arith.constant 0 : index
    %c0_0 = arith.constant 0 : index
    %0 = vector.load %arg1[%c0, %c0_0] : memref<4x256xf32, #tpu.memory_space<vmem>>, vector<4x256xf32>
    %c0_1 = arith.constant 0 : index
    %c0_2 = arith.constant 0 : index
    %1 = vector.load %arg9[%c0_1, %c0_2] : memref<9x256xf32, #tpu.memory_space<vmem>>, vector<9x256xf32>
    %c0_3 = arith.constant 0 : index
    %c0_4 = arith.constant 0 : index
    %2 = vector.load %arg2[%c0_3, %c0_4] : memref<8x4xf32, #tpu.memory_space<vmem>>, vector<8x4xf32>
    %cst = arith.constant dense<0.000000e+00> : vector<8x256xf32>
    %3 = tpu.matmul %2, %0, %cst {dimension_numbers = #tpu.dot_dimension_numbers<[1], [0], [0], [1], [0, 0, 1, 1], [], []>, precision = #tpu.contract_precision<fp32>} : vector<8x4xf32>, vector<4x256xf32>, vector<8x256xf32> -> vector<8x256xf32>
    %c0_5 = arith.constant 0 : index
    %c0_6 = arith.constant 0 : index
    %4 = vector.load %arg3[%c0_5, %c0_6] : memref<8x1xf32, #tpu.memory_space<vmem>>, vector<8x1xf32>
    %5 = vector.broadcast %4 : vector<8x1xf32> to vector<8x256xf32>
    %6 = arith.addf %3, %5 : vector<8x256xf32>
    %cst_7 = arith.constant 2.000000e+01 : f32
    %7 = vector.broadcast %cst_7 : f32 to vector<8x256xf32>
    %8 = arith.minimumf %6, %7 : vector<8x256xf32>
    %9 = math.exp %8 : vector<8x256xf32>
    %cst_8 = arith.constant 2.000000e+00 : f32
    %10 = vector.broadcast %cst_8 : f32 to vector<8x256xf32>
    %11 = arith.addf %9, %10 : vector<8x256xf32>
    %12 = arith.mulf %9, %11 : vector<8x256xf32>
    %cst_9 = arith.constant 2.000000e+00 : f32
    %13 = vector.broadcast %cst_9 : f32 to vector<8x256xf32>
    %14 = arith.addf %12, %13 : vector<8x256xf32>
    %15 = arith.divf %12, %14 : vector<8x256xf32>
    %16 = arith.mulf %6, %15 : vector<8x256xf32>
    %c0_10 = arith.constant 0 : index
    %c0_11 = arith.constant 0 : index
    %17 = vector.load %arg8[%c0_10, %c0_11] : memref<16x8xf32, #tpu.memory_space<vmem>>, vector<16x8xf32>
    %cst_12 = arith.constant dense<0.000000e+00> : vector<16x256xf32>
    %18 = tpu.matmul %17, %16, %cst_12 {dimension_numbers = #tpu.dot_dimension_numbers<[1], [0], [0], [1], [0, 0, 1, 1], [], []>, precision = #tpu.contract_precision<fp32>} : vector<16x8xf32>, vector<8x256xf32>, vector<16x256xf32> -> vector<16x256xf32>
    %c0_13 = arith.constant 0 : index
    %c0_14 = arith.constant 0 : index
    %19 = vector.load %arg4[%c0_13, %c0_14] : memref<16x72xf32, #tpu.memory_space<vmem>>, vector<16x72xf32>
    %c17_i32 = arith.constant 17 : i32
    %20 = tpu.dynamic_rotate %16 by %c17_i32 dim 1 : vector<8x256xf32>, i32 -> vector<8x256xf32>
    %21 = vector.extract_strided_slice %1 {offsets = [0, 0], sizes = [1, 256], strides = [1, 1]} : vector<9x256xf32> to vector<1x256xf32>
    %22 = vector.broadcast %21 : vector<1x256xf32> to vector<8x256xf32>
    %23 = arith.mulf %20, %22 : vector<8x256xf32>
    %c16_i32 = arith.constant 16 : i32
    %24 = tpu.dynamic_rotate %16 by %c16_i32 dim 1 : vector<8x256xf32>, i32 -> vector<8x256xf32>
    %25 = vector.extract_strided_slice %1 {offsets = [1, 0], sizes = [1, 256], strides = [1, 1]} : vector<9x256xf32> to vector<1x256xf32>
    %26 = vector.broadcast %25 : vector<1x256xf32> to vector<8x256xf32>
    %27 = arith.mulf %24, %26 : vector<8x256xf32>
    %c15_i32 = arith.constant 15 : i32
    %28 = tpu.dynamic_rotate %16 by %c15_i32 dim 1 : vector<8x256xf32>, i32 -> vector<8x256xf32>
    %29 = vector.extract_strided_slice %1 {offsets = [2, 0], sizes = [1, 256], strides = [1, 1]} : vector<9x256xf32> to vector<1x256xf32>
    %30 = vector.broadcast %29 : vector<1x256xf32> to vector<8x256xf32>
    %31 = arith.mulf %28, %30 : vector<8x256xf32>
    %c1_i32 = arith.constant 1 : i32
    %32 = tpu.dynamic_rotate %16 by %c1_i32 dim 1 : vector<8x256xf32>, i32 -> vector<8x256xf32>
    %33 = vector.extract_strided_slice %1 {offsets = [3, 0], sizes = [1, 256], strides = [1, 1]} : vector<9x256xf32> to vector<1x256xf32>
    %34 = vector.broadcast %33 : vector<1x256xf32> to vector<8x256xf32>
    %35 = arith.mulf %32, %34 : vector<8x256xf32>
    %c255_i32 = arith.constant 255 : i32
    %36 = tpu.dynamic_rotate %16 by %c255_i32 dim 1 : vector<8x256xf32>, i32 -> vector<8x256xf32>
    %37 = vector.extract_strided_slice %1 {offsets = [5, 0], sizes = [1, 256], strides = [1, 1]} : vector<9x256xf32> to vector<1x256xf32>
    %38 = vector.broadcast %37 : vector<1x256xf32> to vector<8x256xf32>
    %39 = arith.mulf %36, %38 : vector<8x256xf32>
    %c241_i32 = arith.constant 241 : i32
    %40 = tpu.dynamic_rotate %16 by %c241_i32 dim 1 : vector<8x256xf32>, i32 -> vector<8x256xf32>
    %41 = vector.extract_strided_slice %1 {offsets = [6, 0], sizes = [1, 256], strides = [1, 1]} : vector<9x256xf32> to vector<1x256xf32>
    %42 = vector.broadcast %41 : vector<1x256xf32> to vector<8x256xf32>
    %43 = arith.mulf %40, %42 : vector<8x256xf32>
    %c240_i32 = arith.constant 240 : i32
    %44 = tpu.dynamic_rotate %16 by %c240_i32 dim 1 : vector<8x256xf32>, i32 -> vector<8x256xf32>
    %45 = vector.extract_strided_slice %1 {offsets = [7, 0], sizes = [1, 256], strides = [1, 1]} : vector<9x256xf32> to vector<1x256xf32>
    %46 = vector.broadcast %45 : vector<1x256xf32> to vector<8x256xf32>
    %47 = arith.mulf %44, %46 : vector<8x256xf32>
    %c239_i32 = arith.constant 239 : i32
    %48 = tpu.dynamic_rotate %16 by %c239_i32 dim 1 : vector<8x256xf32>, i32 -> vector<8x256xf32>
    %49 = vector.extract_strided_slice %1 {offsets = [8, 0], sizes = [1, 256], strides = [1, 1]} : vector<9x256xf32> to vector<1x256xf32>
    %50 = vector.broadcast %49 : vector<1x256xf32> to vector<8x256xf32>
    %51 = arith.mulf %48, %50 : vector<8x256xf32>
    %52 = tpu.concatenate %23, %27, %31, %35, %16, %39, %43, %47, %51 in 0 : vector<8x256xf32>, vector<8x256xf32>, vector<8x256xf32>, vector<8x256xf32>, vector<8x256xf32>, vector<8x256xf32>, vector<8x256xf32>, vector<8x256xf32>, vector<8x256xf32> -> vector<72x256xf32>
    %cst_15 = arith.constant dense<0.000000e+00> : vector<16x256xf32>
    %53 = tpu.matmul %19, %52, %cst_15 {dimension_numbers = #tpu.dot_dimension_numbers<[1], [0], [0], [1], [0, 0, 1, 1], [], []>, precision = #tpu.contract_precision<fp32>} : vector<16x72xf32>, vector<72x256xf32>, vector<16x256xf32> -> vector<16x256xf32>
    %c0_16 = arith.constant 0 : index
    %c0_17 = arith.constant 0 : index
    %54 = vector.load %arg5[%c0_16, %c0_17] : memref<16x1xf32, #tpu.memory_space<vmem>>, vector<16x1xf32>
    %55 = vector.broadcast %54 : vector<16x1xf32> to vector<16x256xf32>
    %56 = arith.addf %53, %55 : vector<16x256xf32>
    %cst_18 = arith.constant 0.000000e+00 : f32
    %57 = vector.broadcast %cst_18 : f32 to vector<16x256xf32>
    %58 = arith.maximumf %56, %57 : vector<16x256xf32>
    %c0_19 = arith.constant 0 : index
    %c0_20 = arith.constant 0 : index
    %59 = vector.load %arg6[%c0_19, %c0_20] : memref<16x144xf32, #tpu.memory_space<vmem>>, vector<16x144xf32>
    %c17_i32_21 = arith.constant 17 : i32
    %60 = tpu.dynamic_rotate %58 by %c17_i32_21 dim 1 : vector<16x256xf32>, i32 -> vector<16x256xf32>
    %61 = vector.extract_strided_slice %1 {offsets = [0, 0], sizes = [1, 256], strides = [1, 1]} : vector<9x256xf32> to vector<1x256xf32>
    %62 = vector.broadcast %61 : vector<1x256xf32> to vector<16x256xf32>
    %63 = arith.mulf %60, %62 : vector<16x256xf32>
    %c16_i32_22 = arith.constant 16 : i32
    %64 = tpu.dynamic_rotate %58 by %c16_i32_22 dim 1 : vector<16x256xf32>, i32 -> vector<16x256xf32>
    %65 = vector.extract_strided_slice %1 {offsets = [1, 0], sizes = [1, 256], strides = [1, 1]} : vector<9x256xf32> to vector<1x256xf32>
    %66 = vector.broadcast %65 : vector<1x256xf32> to vector<16x256xf32>
    %67 = arith.mulf %64, %66 : vector<16x256xf32>
    %c15_i32_23 = arith.constant 15 : i32
    %68 = tpu.dynamic_rotate %58 by %c15_i32_23 dim 1 : vector<16x256xf32>, i32 -> vector<16x256xf32>
    %69 = vector.extract_strided_slice %1 {offsets = [2, 0], sizes = [1, 256], strides = [1, 1]} : vector<9x256xf32> to vector<1x256xf32>
    %70 = vector.broadcast %69 : vector<1x256xf32> to vector<16x256xf32>
    %71 = arith.mulf %68, %70 : vector<16x256xf32>
    %c1_i32_24 = arith.constant 1 : i32
    %72 = tpu.dynamic_rotate %58 by %c1_i32_24 dim 1 : vector<16x256xf32>, i32 -> vector<16x256xf32>
    %73 = vector.extract_strided_slice %1 {offsets = [3, 0], sizes = [1, 256], strides = [1, 1]} : vector<9x256xf32> to vector<1x256xf32>
    %74 = vector.broadcast %73 : vector<1x256xf32> to vector<16x256xf32>
    %75 = arith.mulf %72, %74 : vector<16x256xf32>
    %c255_i32_25 = arith.constant 255 : i32
    %76 = tpu.dynamic_rotate %58 by %c255_i32_25 dim 1 : vector<16x256xf32>, i32 -> vector<16x256xf32>
    %77 = vector.extract_strided_slice %1 {offsets = [5, 0], sizes = [1, 256], strides = [1, 1]} : vector<9x256xf32> to vector<1x256xf32>
    %78 = vector.broadcast %77 : vector<1x256xf32> to vector<16x256xf32>
    %79 = arith.mulf %76, %78 : vector<16x256xf32>
    %c241_i32_26 = arith.constant 241 : i32
    %80 = tpu.dynamic_rotate %58 by %c241_i32_26 dim 1 : vector<16x256xf32>, i32 -> vector<16x256xf32>
    %81 = vector.extract_strided_slice %1 {offsets = [6, 0], sizes = [1, 256], strides = [1, 1]} : vector<9x256xf32> to vector<1x256xf32>
    %82 = vector.broadcast %81 : vector<1x256xf32> to vector<16x256xf32>
    %83 = arith.mulf %80, %82 : vector<16x256xf32>
    %c240_i32_27 = arith.constant 240 : i32
    %84 = tpu.dynamic_rotate %58 by %c240_i32_27 dim 1 : vector<16x256xf32>, i32 -> vector<16x256xf32>
    %85 = vector.extract_strided_slice %1 {offsets = [7, 0], sizes = [1, 256], strides = [1, 1]} : vector<9x256xf32> to vector<1x256xf32>
    %86 = vector.broadcast %85 : vector<1x256xf32> to vector<16x256xf32>
    %87 = arith.mulf %84, %86 : vector<16x256xf32>
    %c239_i32_28 = arith.constant 239 : i32
    %88 = tpu.dynamic_rotate %58 by %c239_i32_28 dim 1 : vector<16x256xf32>, i32 -> vector<16x256xf32>
    %89 = vector.extract_strided_slice %1 {offsets = [8, 0], sizes = [1, 256], strides = [1, 1]} : vector<9x256xf32> to vector<1x256xf32>
    %90 = vector.broadcast %89 : vector<1x256xf32> to vector<16x256xf32>
    %91 = arith.mulf %88, %90 : vector<16x256xf32>
    %92 = tpu.concatenate %63, %67, %71, %75, %58, %79, %83, %87, %91 in 0 : vector<16x256xf32>, vector<16x256xf32>, vector<16x256xf32>, vector<16x256xf32>, vector<16x256xf32>, vector<16x256xf32>, vector<16x256xf32>, vector<16x256xf32>, vector<16x256xf32> -> vector<144x256xf32>
    %cst_29 = arith.constant dense<0.000000e+00> : vector<16x256xf32>
    %93 = tpu.matmul %59, %92, %cst_29 {dimension_numbers = #tpu.dot_dimension_numbers<[1], [0], [0], [1], [0, 0, 1, 1], [], []>, precision = #tpu.contract_precision<fp32>} : vector<16x144xf32>, vector<144x256xf32>, vector<16x256xf32> -> vector<16x256xf32>
    %94 = arith.addf %93, %18 : vector<16x256xf32>
    %c0_30 = arith.constant 0 : index
    %c0_31 = arith.constant 0 : index
    %95 = vector.load %arg7[%c0_30, %c0_31] : memref<16x1xf32, #tpu.memory_space<vmem>>, vector<16x1xf32>
    %96 = vector.broadcast %95 : vector<16x1xf32> to vector<16x256xf32>
    %97 = arith.addf %94, %96 : vector<16x256xf32>
    %cst_32 = arith.constant 0.000000e+00 : f32
    %98 = vector.broadcast %cst_32 : f32 to vector<16x256xf32>
    %99 = arith.maximumf %97, %98 : vector<16x256xf32>
    %c0_33 = arith.constant 0 : index
    %c0_34 = arith.constant 0 : index
    %100 = vector.load %arg10[%c0_33, %c0_34] : memref<16x256xf32, #tpu.memory_space<vmem>>, vector<16x256xf32>
    tpu.vector_store %arg10[%c0_33, %c0_34], %99 {strides = array<i32>} : memref<16x256xf32, #tpu.memory_space<vmem>>, vector<16x256xf32>,
    return
  }
  func.func @transform_0(%arg0: i32) -> (i32, i32) {
    %c0_i32 = arith.constant 0 : i32
    %c0_i32_0 = arith.constant 0 : i32
    return %c0_i32, %arg0 : i32, i32
  }
  func.func @transform_1(%arg0: i32) -> (i32, i32) {
    %c0_i32 = arith.constant 0 : i32
    %c0_i32_0 = arith.constant 0 : i32
    %c0_i32_1 = arith.constant 0 : i32
    return %c0_i32, %c0_i32_0 : i32, i32
  }
  func.func @transform_2(%arg0: i32) -> (i32, i32) {
    %c0_i32 = arith.constant 0 : i32
    %c0_i32_0 = arith.constant 0 : i32
    %c0_i32_1 = arith.constant 0 : i32
    return %c0_i32, %c0_i32_0 : i32, i32
  }
  func.func @transform_3(%arg0: i32) -> (i32, i32) {
    %c0_i32 = arith.constant 0 : i32
    %c0_i32_0 = arith.constant 0 : i32
    %c0_i32_1 = arith.constant 0 : i32
    return %c0_i32, %c0_i32_0 : i32, i32
  }
  func.func @transform_4(%arg0: i32) -> (i32, i32) {
    %c0_i32 = arith.constant 0 : i32
    %c0_i32_0 = arith.constant 0 : i32
    %c0_i32_1 = arith.constant 0 : i32
    return %c0_i32, %c0_i32_0 : i32, i32
  }
  func.func @transform_5(%arg0: i32) -> (i32, i32) {
    %c0_i32 = arith.constant 0 : i32
    %c0_i32_0 = arith.constant 0 : i32
    %c0_i32_1 = arith.constant 0 : i32
    return %c0_i32, %c0_i32_0 : i32, i32
  }
  func.func @transform_6(%arg0: i32) -> (i32, i32) {
    %c0_i32 = arith.constant 0 : i32
    %c0_i32_0 = arith.constant 0 : i32
    %c0_i32_1 = arith.constant 0 : i32
    return %c0_i32, %c0_i32_0 : i32, i32
  }
  func.func @transform_7(%arg0: i32) -> (i32, i32) {
    %c0_i32 = arith.constant 0 : i32
    %c0_i32_0 = arith.constant 0 : i32
    %c0_i32_1 = arith.constant 0 : i32
    return %c0_i32, %c0_i32_0 : i32, i32
  }
  func.func @transform_8(%arg0: i32) -> (i32, i32) {
    %c0_i32 = arith.constant 0 : i32
    %c0_i32_0 = arith.constant 0 : i32
    %c0_i32_1 = arith.constant 0 : i32
    return %c0_i32, %c0_i32_0 : i32, i32
  }
  func.func @transform_9(%arg0: i32) -> (i32, i32) {
    %c0_i32 = arith.constant 0 : i32
    %c0_i32_0 = arith.constant 0 : i32
    return %c0_i32, %arg0 : i32, i32
  }
}

</mosaic_0001>

<bundles_post_ra>
// kernel: tpu_custom_call.1
= control target key start
LH: loop header
LB: loop body
LE: loop exit
PB: predicated region body
PF: predicated region fallthrough
CT: control target
= control target key end

     0   :  { %14 = vsyncpa [#allocation3], 0  ;;  %s5520_s0 = inlined_call_operand.hbm [shape: f32[4,512], index: 0, kind: input, shape index: {}]   ;;  %s5521_s1 = inlined_call_operand.vmem [shape: f32[8,4], index: 1, kind: input, shape index: {}]   ;;  %s5522_s2 = inlined_call_operand.vmem [shape: f32[8,1], index: 2, kind: input, shape index: {}]   ;;  %s5523_s3 = inlined_call_operand.vmem [shape: f32[16,72], index: 3, kind: input, shape index: {}]   ;;  %s5524_s4 = inlined_call_operand.vmem [shape: f32[16,1], index: 4, kind: input, shape index: {}]   ;;  %s5525_s5 = inlined_call_operand.vmem [shape: f32[16,144], index: 5, kind: input, shape index: {}]   ;;  %s5526_s6 = inlined_call_operand.vmem [shape: f32[16,1], index: 6, kind: input, shape index: {}]   ;;  %s5527_s7 = inlined_call_operand.vmem [shape: f32[16,8], index: 7, kind: input, shape index: {}]   ;;  %s5528_s8 = inlined_call_operand.vmem [shape: f32[9,256], index: 8, kind: input, shape index: {}]   ;;  %s5529_s9 = inlined_call_operand.hbm [shape: f32[16,512], index: 9, kind: output, shape index: {}]  }
   0x1   :  { %16 = vsyncpa [#allocation3 + $0x1], 0 }
   0x2   :  { %17 = vsyncpa [#allocation4], 0 }
   0x3   :  { %19 = vsyncpa [#allocation4 + $0x1], 0  ;;  %s4138_s30 = smov 0   ;;  %s4140_s10 = smov 0  }
   0x4   :  { %s4142_s11 = smov 0   ;;  %s4144_s12 = smov 0  }
   0x5 LB: > { %s4159_s13 = sadd.s32 4294967295, %s4072_s12   ;;  %s3497_s14 = sadd.s32 4294967294, %s4072_s12   ;;  %s4072_s12 = sphi %s4144_s12, %s5785_s12   ;;  %s4068_s11 = sphi %s4142_s11, %s5784_s11   ;;  %s4064_s10 = sphi %s4140_s10, %s5783_s10   ;;  %s4060_s30 = sphi %s4138_s30, %s5782_s30  }
   0x6   : > { %s4163_s15 = sadd.s32 1, %s4072_s12   ;;  %s32_s16 = sadd.s32 1, %s4068_s11 }
   0x7   : > { %s29_s17 = ssub.s32 %s4072_s12, %s4163_s15  ;;  %p39_p0 = scmp.ne.s32.totalorder %s4068_s11, %s4064_s10 }
   0x8   : > { %p30_p1 = scmp.eq.s32.totalorder %s29_s17, 0  ;;  %p40_p2 = scmp.eq.s32.totalorder %s4072_s12, 0 }
   0x9   : > { %p45_p3 = scmp.ne.s32.totalorder %s4064_s10, %s4060_s30  ;;  %p46_p4 = scmp.eq.s32.totalorder %s4159_s13, 0 }
   0xa   : > { %s4175_s18 = scalar_select %p30_p1, %s4068_s11, %s32_s16  }
   0xb   : > { %p4177_p5 = por %p40_p2, %p39_p0  ;;  %p4181_p6 = por %p46_p4, %p45_p3 }
   0xc   : > { %p237_p7 = scmp.eq.s32.totalorder %s4159_s13, 1  ;;  %p243_p8 = scmp.eq.s32.totalorder %s3497_s14, 1 }
   0xd   : > { %p3919_p10 = scmp.lt.s32.totalorder %s4072_s12, 2  ;;  %s287_s23 = sand.u32 1, %s4068_s11  }
   0xe   : > { %p4188_p11 = por %p237_p7, %p39_p0  ;;  %p4192_p12 = por %p243_p8, %p45_p3 }
   0xf   : > { %s3513_s24 = sshll.u32 %s4072_s12, 7  ;;  %s3500_s25 = sshll.u32 %s287_s23, 3 }
  0x10   : > { %s5612_s21 = scalar_select %p4188_p11, 1, 0 }
  0x11   : > { %s5613_s22 = scalar_select %p4192_p12, 1, 0 }
  0x12   : > { %s4201_s28 = scalar_lea.hbm %s5520_s0, %s3513_s24  ;;  %s291_s29 = scalar_lea.vmem [#allocation2], %s3500_s25 }
  0x13   : > { %s299_s14 = sshll.u32 %s291_s29, 4  ;;  %p4205_p13 = pnand %p3919_p10, %p4177_p5  ;;  %s4209_s14 = int_to_ptr.vmem [resolvable:$true] %s299_s14 }
  0x14   : > { %s288_s17 = scalar_lea.sflag [#allocation3], %s287_s23  ;;  %s3976_s24 = scalar_lea.hbm %s4201_s28, 128 }
  0x15   : > { %p3977_p2 = scmp.ne.s32.totalorder %s4201_s28, %s3976_s24  ;;  %p3978_p3 = pneg %p4205_p13 }
  0x16   : > { %s3981_s26 = scalar_lea.hbm %s5520_s0, 256  ;;  %p3982_p5 = scmp.lt.u32.totalorder %s4201_s28, %s5520_s0 }
  0x17   : > { %p3979_p4 = pnand %p3978_p3, %p3977_p2  ;;  %p3983_p8 = scmp.lt.u32.totalorder %s3981_s26, %s3976_s24 }
  0x18   : > { %p3985_p9 = scmp.lt.u32.totalorder %s3976_s24, %s4201_s28 }
  0x19   : > { %p3980_p7 = pneg %p3979_p4  ;;  %p3984_p10 = por %p3983_p8, %p3982_p5 }
  0x1b   : > { %p3986_p0 = por %p3985_p9, %p3984_p10 }
  0x1d   : > { %p3987_p1 = pnand %p3986_p0, %p3980_p7 }
  0x1f   : > { %3990 = shalt.err (!%p3987_p1)
}
  0x20   : > { %s3991_s23 = scalar_lea.vmem %s4209_s14, 128  ;;  %s4074_s19 = smov [#allocation2]  }
  0x21   : > { %p3992_p2 = scmp.ne.s32.totalorder %s4209_s14, %s3991_s23  ;;  %s3996_s25 = sshll.u32 %s4074_s19, 4  ;;  %s3997_s25 = int_to_ptr.vmem [resolvable:$false] %s3996_s25 }
  0x22   : > { %s3998_s27 = scalar_lea.vmem %s3997_s25, 256  ;;  %p3999_p11 = scmp.lt.s32.totalorder %s4209_s14, %s3997_s25 }
  0x23   : > { %p3994_p4 = pnand %p3992_p2, %p3978_p3  ;;  %p4000_p5 = scmp.lt.s32.totalorder %s3998_s27, %s3991_s23 }
  0x25   : > { %p3995_p12 = pneg %p3994_p4  ;;  %p4001_p8 = por %p4000_p5, %p3999_p11 }
  0x27   : > { %p4002_p9 = pnand %p4001_p8, %p3995_p12 }
  0x29   : > { %4005 = shalt.err (!%p4002_p9)
}
  0x2a   : > { %3914 = dma.hbm_to_vmem [thread:$0]  (!%p4205_p13), %s4201_s28, 128, %s4209_s14, %s288_s17  }
  0x2b   : > { %p5615_p0 = scmp.lt.s32.totalorder %s4072_s12, 3  ;;  %p5616_p1 = scmp.ge.s32.totalorder %s4072_s12, 1 }
  0x2d   : > { %p305_p3 = pnand %p5616_p1, %p5615_p0 }
  0x2f   : > { %308 = sbr.rel (%p305_p3) target bundleno = 1348 (0x544), region = 56 }
  0x36   : > { %s4243_s24 = sand.u32 1, %s4064_s10  }
  0x37   : > { %s3504_s26 = sshll.u32 %s4243_s24, 3  ;;  %s311_s29 = scalar_lea.sflag [#allocation3], %s4243_s24 }
  0x38   : > { %s314_s23 = scalar_lea.vmem [#allocation2], %s3504_s26 }
  0x39   : > { %4051 = dma.done.wait (%p4181_p6), %s311_s29, 128  }
  0x3a   : > { %4053 = vsyncadd (%p4181_p6), %s311_s29, 4294967168  ;;  %v5540_v0 = vmov 0.0   ;;  %v4076_v1 = vmov 0   ;;  %vm369_vm0 = vcmask 1043456   ;;  %vm365_vm1 = vcmask 31744   ;;  %v351_v2 = vld [vmem:[%s314_s23] sm:$0xff] }
  0x3b   : > { %602 = vmatprep.mubr.f32.mxu0 %v5540_v0  ;;  %440 = vmatprep.mubr.f32.mxu1 %v5540_v0  ;;  %v356_v3 = vld [vmem:[%s5521_s1] sm:$0xff]  ;;  %v364_v5 = vcombine.high %v351_v2, %v351_v2  ;;  %v370_v6 = vsel %vm369_vm0, %v351_v2, 0  ;;  %vm859_vm2 = vcmask 64512   ;;  %v858_v47 = vld [vmem:[%s5527_s7 + $0x8] sm:$0xff]  ;;  %s4077_s26 = smov 16   ;;  %s4078_s29 = smov 17  }
  0x3c   : > { %3965 = vset.pattern.permute.xlu0 %v4076_v1  ;;  %3966 = vset.pattern.permute.xlu1 %v4076_v1  ;;  %v357_v4 = vld [vmem:[%s5522_s2] sm:$0xff]  ;;  %v367_v7 = vsel %vm365_vm1, %v356_v3, 0  ;;  %v376_v8 = vand.u32 4294901760, %v370_v6  ;;  %v864_v49 = vsel %vm859_vm2, %v858_v47, 0  ;;  %s4079_s23 = smov 15   ;;  %s4080_s28 = smov 1  }
  0x3d   : > { %360 = vperm.xlu0 %3965, %v357_v4   ;;  %v441_v9 = vand.u32 4294901760, %v367_v7  ;;  %v372_v10 = vsel %vm369_vm0, %v364_v5, 0  ;;  %v857_v41 = vld [vmem:[%s5527_s7] sm:$0xff]  ;;  %v4276_v51 = vand.u32 4294901760, %v864_v49  ;;  %s4081_s14 = smov 127   ;;  %s5535_s16 = smov 113  }
  0x3e   : > { %v374_v11 = vand.u32 4294901760, %v372_v10  ;;  %v459_v12 = vsub.f32 %v370_v6, %v376_v8  ;;  %v861_v45 = vsel %vm859_vm2, %v857_v41, 0  ;;  %s5533_s17 = smov 112   ;;  %s5531_s20 = smov 111   ;;  %vm1532_vm3 = vcmask 588800  }
  0x3f   : > { %v442_v13 = vsub.f32 %v367_v7, %v441_v9  ;;  %v4271_v48 = vand.u32 4294901760, %v861_v45  ;;  %v4280_v53 = vsub.f32 %v864_v49, %v4276_v51  ;;  %s5660_s19 = smov 111   ;;  %vm2397_vm12 = vcmask 130048   ;;  %s3514_s27 = sshll.u32 %s4159_s13, 8 }
  0x40   : > { %v453_v14 = vsub.f32 %v372_v10, %v374_v11  ;;  %375 = vmatprep.subr.mxu1 %v374_v11  ;;  %v460_v16 = vand.u32 4294901760, %v459_v12  ;;  %p5779_p11 = scmp.ne.s32.totalorder %s5612_s21, 0 }
  0x41   : > { %v443_v15 = vand.u32 4294901760, %v442_v13  ;;  %377 = vmatpush1.msra.mxu1 %v376_v8  ;;  %v4274_v50 = vsub.f32 %v861_v45, %v4271_v48  ;;  %v946_v60 = vand.u32 4294901760, %v4280_v53 }
  0x42   : > { %536 = vmatprep.subr.mxu0 %v453_v14  ;;  %v454_v18 = vand.u32 4294901760, %v453_v14  ;;  %v461_v19 = vsub.f32 %v459_v12, %v460_v16 }
  0x43   : > { %v444_v17 = vsub.f32 %v442_v13, %v443_v15  ;;  %539 = vmatpush1.msra.mxu0 %v459_v12  ;;  %v935_v52 = vand.u32 4294901760, %v4274_v50  ;;  %v947_v2 = vsub.f32 %v4280_v53, %v946_v60  ;;  %v1521_v12 = vld [vmem:[%s5524_s4 + $0x8] sm:$0xff] }
  0x44   : > { %605 = vmatmul.mubr.f32.vlgmr.msra.gmra.mrb[0].mxu0 %v442_v13  ;;  %612 = vmatprep.subr.mxu0 %v374_v11  ;;  %v455_v21 = vsub.f32 %v453_v14, %v454_v18  ;;  %v462_v22 = vand.u32 4294901760, %v461_v19  ;;  %v1386_v13 = vlaneseq  ;;  %v4375_v19 = vld [vmem:[%s5528_s8] sm:$0xff] }
  0x45   : > { %v445_v20 = vand.u32 4294901760, %v444_v17  ;;  %614 = vmatpush1.msra.mxu0 %v376_v8  ;;  %677 = vmatprep.mubr.f32.mxu0 %v5540_v0  ;;  %v936_v59 = vsub.f32 %v4274_v50, %v935_v52  ;;  %v948_v7 = vand.u32 4294901760, %v947_v2 }
  0x46   : > { %690 = vmatprep.subr.mxu0 %v454_v18  ;;  %v456_v23 = vand.u32 4294901760, %v455_v21  ;;  %v4367_v14 = vshrl.u32 %v1386_v13, 7  ;;  %v4384_v21 = vld [vmem:[%s5528_s8 + $0x8] sm:$0xff] }
  0x47   : > { %446 = vmatmul.mubr.f32.vlgmr.msra.gmra.mrb[0].mxu1 %v445_v20  ;;  %v937_v1 = vand.u32 4294901760, %v936_v59  ;;  %v1380_v20 = vld [vmem:[%s5523_s3] sm:$0xff] }
  0x48   : > { %526 = vmatprep.mubr.f32.mxu1 %v5540_v0  ;;  %457 = vmatprep.subr.mxu1 %v456_v23  ;;  %v1534_v23 = vsel %vm1532_vm3, %v1380_v20, 0 }
  0x49   : > { %463 = vmatpush1.msra.mxu1 %v462_v22 }
  0x4c   : > { %681 = vmatmul.mubr.f32.vlgmr.msra.gmra.mrb[0].mxu0 %v443_v15  ;;  %v4369_v15 = vand.u32 127, %v1386_v13 }
  0x4d   : > { %694 = vmatpush1.msra.mxu0 %v460_v16  ;;  %757 = vmatprep.mubr.f32.mxu0 %v5540_v0  ;;  %v1410_v16 = vsub.s32 1, %v4367_v14 }
  0x4e   : > { %766 = vmatprep.subr.mxu0 %v374_v11  ;;  %vm1405_vm4 = vcmp.lt.s32.totalorder %v4369_v15, 16  ;;  %vm1422_vm5 = vcmp.lt.s32.totalorder %v4369_v15, 15  ;;  %vm1439_vm6 = vcmp.lt.s32.totalorder %v4369_v15, 1  ;;  %vm1388_vm7 = vcmp.lt.s32.totalorder %v4369_v15, 17 }
  0x4f   : > { %528 = vmatmul.mubr.f32.vlgmr.msra.gmra.mrb[0].mxu1 %v441_v9  ;;  %v4387_v22 = vrot.slane %v4375_v19, %v1410_v16  ;;  %vm1456_vm8 = vcmp.lt.s32.totalorder %v4369_v15, 127  ;;  %vm1473_vm9 = vcmp.lt.s32.totalorder %v4369_v15, 113  ;;  %vm1490_vm10 = vcmp.lt.s32.totalorder %v4369_v15, 112 }
  0x50   : > { %932 = vmatprep.mubr.f32.mxu1 %v5540_v0  ;;  %vm1507_vm11 = vcmp.lt.s32.totalorder %v4369_v15, 111 }
  0x54   : > { %759 = vmatmul.mubr.f32.vlgmr.msra.gmra.mrb[0].mxu0 %v441_v9 }
  0x55   : > { %768 = vmatpush1.msra.mxu0 %v376_v8  ;;  %831 = vmatprep.mubr.f32.mxu0 %v5540_v0 }
  0x5c   : > { %833 = vmatmul.mubr.f32.vlgmr.msra.gmra.mrb[0].mxu0 %v441_v9 }
  0x5d   : > { %1621 = vmatprep.mubr.f32.mxu0 %v5540_v0 }
  0xbc   : > { %v361_v26 = vpop.permute.xlu0 %360 }
 0x122   : > { %v529_v24 = vpop.f32.mrb[0].mxu1 }
 0x123   : > { %v531_v25 = vpop.f32.mrb[1].mxu1  ;;  %v3827_v27 = vadd.f32 %v529_v24, %v361_v26 }
 0x124   : > { %v3829_v28 = vadd.f32 %v531_v25, %v361_v26  ;;  %v1427_v26 = vsub.s32 2, %v4367_v14 }
 0x12f   : > { %v834_v29 = vpop.f32.mrb[0].mxu0 }
 0x130   : > { %v3828_v30 = vadd.f32 %v3827_v27, %v834_v29  ;;  %v836_v31 = vpop.f32.mrb[1].mxu0  ;;  %v1381_v27 = vld [vmem:[%s5523_s3 + $0x8] sm:$0xff]  ;;  %v1444_v29 = vsub.s32 3, %v4367_v14 }
 0x131   : > { %v3830_v32 = vadd.f32 %v3829_v28, %v836_v31  ;;  %v4399_v31 = vrot.slane %v4384_v21, %v1410_v16 }
 0x132   : > { %v839_v33 = vmin.f32 %v3828_v30, 20.0 }
 0x133   : > { %v840_v34 = vmin.f32 %v3830_v32, 20.0 }
 0x134   : > { %v841_v35 = vmul.f32 1.442695, %v839_v33  ;;  %v1520_v33 = vld [vmem:[%s5524_s4] sm:$0xff] }
 0x135   : > { %v843_v36 = vmul.f32 1.442695, %v840_v34 }
 0x136   : > { %3968 = vpow2.f32 %v841_v35 }
 0x137   : > { %3970 = vpow2.f32 %v843_v36  ;;  %v1461_v36 = vsub.s32 5, %v4367_v14 }
 0x140   : > { %v3969_v37 = vpop.eup %3968 }
 0x141   : > { %v3971_v38 = vpop.eup %3970  ;;  %v845_v39 = vadd.f32 2.0, %v3969_v37 }
 0x142   : > { %v846_v40 = vadd.f32 2.0, %v3971_v38 }
 0x143   : > { %v847_v42 = vmul.f32 %v3969_v37, %v845_v39  ;;  %v1537_v37 = vsel %vm1532_vm3, %v1381_v27, 0  ;;  %v4413_v39 = vrot.slane %v4375_v19, %v1427_v26 }
 0x144   : > { %v848_v43 = vmul.f32 %v3971_v38, %v846_v40  ;;  %v4416_v40 = vrot.slane %v4384_v21, %v1427_v26  ;;  %v4437_v49 = vand.u32 4294901760, %v1537_v37 }
 0x145   : > { %v849_v44 = vadd.f32 2.0, %v847_v42  ;;  %5617 = vst [vmem:[#allocation8_spill] sm:$0xff] %v4413_v39 }
 0x146   : > { %v850_v46 = vadd.f32 2.0, %v848_v43 }
 0x147   : > { %3972 = vrcp.f32 %v849_v44  ;;  %v4424_v44 = vrot.slane %v4384_v21, %v1444_v29 }
 0x148   : > { %3974 = vrcp.f32 %v850_v46 }
 0x149   : > { %5619 = vst [vmem:[#allocation10_spill] sm:$0xff] %v4424_v44 }
 0x151   : > { %v3973_v54 = vpop.eup %3972 }
 0x152   : > { %v3975_v55 = vpop.eup %3974  ;;  %v852_v56 = vmul.f32 %v3973_v54, %v847_v42  ;;  %v1478_v42 = vsub.s32 6, %v4367_v14 }
 0x153   : > { %v854_v57 = vmul.f32 %v3975_v55, %v848_v43  ;;  %v4421_v43 = vrot.slane %v4375_v19, %v1444_v29 }
 0x154   : > { %v855_v58 = vmul.f32 %v3828_v30, %v852_v56  ;;  %v1393_v30 = vsub.s32 0, %v4367_v14  ;;  %v4448_v55 = vrot.slane %v4375_v19, %v1478_v42  ;;  %v4451_v56 = vrot.slane %v4384_v21, %v1478_v42 }
 0x155   : > { %v856_v61 = vmul.f32 %v3830_v32, %v854_v57  ;;  %v4402_v32 = vand.u32 4294901760, %v1534_v23  ;;  %5618 = vst [vmem:[#allocation9_spill] sm:$0xff] %v4421_v43  ;;  %v1495_v57 = vsub.s32 7, %v4367_v14 }
 0x156   : > { %1401 = vrot.lane.b32.xlu1 %v855_v58, %s4077_s26  ;;  %1382 = vrot.lane.b32.xlu0 %v855_v58, %s4078_s29  ;;  %v4288_v62 = vand.u32 4294901760, %v855_v58  ;;  %v4428_v45 = vrot.slane %v4375_v19, %v1393_v30  ;;  %v4432_v47 = vrot.slane %v4384_v21, %v1393_v30  ;;  %5622 = vst [vmem:[#allocation13_spill] sm:$0xff] %v4448_v55  ;;  %5623 = vst [vmem:[#allocation14_spill] sm:$0xff] %v4451_v56 }
 0x157   : > { %v4290_v63 = vand.u32 4294901760, %v856_v61  ;;  %v4478_v20 = vrot.slane %v4375_v19, %v1495_v57 }
 0x158   : > { %v4296_v3 = vsub.f32 %v855_v58, %v4288_v62 }
 0x159   : > { %867 = vmatprep.subr.mxu1 %v4290_v63  ;;  %v4300_v4 = vsub.f32 %v856_v61, %v4290_v63  ;;  %5624 = vst [vmem:[#allocation15_spill] sm:$0xff] %v4478_v20 }
 0x15a   : > { %1418 = vrot.lane.b32.xlu1 %v855_v58, %s4079_s23  ;;  %1403 = vrot.lane.b32.xlu0 %v856_v61, %s4077_s26  ;;  %v4305_v5 = vand.u32 4294901760, %v4296_v3 }
 0x15b   : > { %869 = vmatpush1.msra.mxu1 %v4288_v62  ;;  %v4309_v6 = vand.u32 4294901760, %v4300_v4 }
 0x15c   : > { %938 = vmatmul.mubr.f32.vlgmr.msra.gmra.mrb[2].mxu1 %v937_v1  ;;  %v964_v9 = vsub.f32 %v4296_v3, %v4305_v5 }
 0x15d   : > { %943 = vmatprep.mubr.f32.mxu1 %v5540_v0  ;;  %v958_v8 = vsub.f32 %v4300_v4, %v4309_v6 }
 0x15e   : > { %1435 = vrot.lane.b32.xlu1 %v855_v58, %s4080_s28  ;;  %1420 = vrot.lane.b32.xlu0 %v856_v61, %s4079_s23  ;;  %v4321_v11 = vand.u32 4294901760, %v964_v9 }
 0x15f   : > { %v4318_v10 = vand.u32 4294901760, %v958_v8  ;;  %v4466_v8 = vsub.f32 %v1537_v37, %v4437_v49 }
 0x160   : > { %949 = vmatmul.mubr.f32.gmra.mrb[4].mxu1 %v948_v7 }
 0x161   : > { %960 = vmatprep.subr.mxu1 %v4318_v10  ;;  %1029 = vmatprep.mubr.f32.mxu1 %v5540_v0 }
 0x162   : > { %1437 = vrot.lane.b32.xlu0 %v856_v61, %s4080_s28  ;;  %1384 = vrot.lane.b32.xlu1 %v856_v61, %s4078_s29 }
 0x163   : > { %966 = vmatpush1.msra.mxu1 %v4321_v11 }
 0x164   : > { %1031 = vmatmul.mubr.f32.vlgmr.msra.gmra.mrb[2].mxu1 %v4271_v48  ;;  %1046 = vmatprep.subr.mxu1 %v4300_v4 }
 0x165   : > { %1049 = vmatpush1.msra.mxu1 %v4296_v3  ;;  %1036 = vmatprep.mubr.f32.mxu1 %v5540_v0 }
 0x166   : > { %1130 = vmatprep.subr.mxu1 %v4290_v63  ;;  %1454 = vrot.lane.b32.xlu0 %v856_v61, %s4081_s14 }
 0x167   : > { %1452 = vrot.lane.b32.xlu1 %v855_v58, %s4081_s14 }
 0x168   : > { %1038 = vmatmul.mubr.f32.gmra.mrb[4].mxu1 %v4276_v51 }
 0x169   : > { %1112 = vmatprep.mubr.f32.mxu1 %v5540_v0 }
 0x16a   : > { %1471 = vrot.lane.b32.xlu0 %v856_v61, %s5535_s16 }
 0x16b   : > { %1469 = vrot.lane.b32.xlu1 %v855_v58, %s5535_s16  ;;  %s5658_s16 = smov 113  }
 0x16c   : > { %1115 = vmatmul.mubr.f32.vlgmr.msra.gmra.mrb[2].mxu1 %v4274_v50 }
 0x16d   : > { %1132 = vmatpush1.msra.mxu1 %v4288_v62  ;;  %1120 = vmatprep.mubr.f32.mxu1 %v5540_v0 }
 0x16e   : > { %1217 = vmatprep.subr.mxu1 %v4309_v6  ;;  %1488 = vrot.lane.b32.xlu0 %v856_v61, %s5533_s17 }
 0x16f   : > { %1486 = vrot.lane.b32.xlu1 %v855_v58, %s5533_s17  ;;  %s5659_s17 = smov 112  }
 0x170   : > { %1123 = vmatmul.mubr.f32.gmra.mrb[4].mxu1 %v4280_v53 }
 0x171   : > { %1195 = vmatprep.mubr.f32.mxu1 %v5540_v0 }
 0x172   : > { %1505 = vrot.lane.b32.xlu0 %v856_v61, %s5531_s20 }
 0x173   : > { %1503 = vrot.lane.b32.xlu1 %v855_v58, %s5531_s20 }
 0x174   : > { %1199 = vmatmul.mubr.f32.vlgmr.msra.gmra.mrb[2].mxu1 %v935_v52  ;;  %v4444_v52 = vrot.slane %v4384_v21, %v1461_v36 }
 0x175   : > { %1221 = vmatpush1.msra.mxu1 %v4305_v5  ;;  %1204 = vmatprep.mubr.f32.mxu1 %v5540_v0 }
 0x176   : > { %1300 = vmatprep.subr.mxu1 %v4290_v63  ;;  %1529 = vperm.xlu0 %3965, %v1521_v12   ;;  %5621 = vst [vmem:[#allocation12_spill] sm:$0xff] %v4444_v52 }
 0x177   : > { %1524 = vperm.xlu1 %3966, %v1520_v33  }
 0x178   : > { %1208 = vmatmul.mubr.f32.gmra.mrb[4].mxu1 %v946_v60 }
 0x179   : > { %1284 = vmatprep.mubr.f32.mxu1 %v5540_v0 }
 0x17c   : > { %1286 = vmatmul.mubr.f32.vlgmr.msra.gmra.mrb[2].mxu1 %v4271_v48 }
 0x17d   : > { %1302 = vmatpush1.msra.mxu1 %v4288_v62  ;;  %1291 = vmatprep.mubr.f32.mxu1 %v5540_v0 }
 0x180   : > { %1293 = vmatmul.mubr.f32.gmra.mrb[4].mxu1 %v4276_v51 }
 0x181   : > { %1365 = vmatprep.mubr.f32.mxu1 %v5540_v0 }
 0x184   : > { %1367 = vmatmul.mubr.f32.vlgmr.msra.gmra.mrb[2].mxu1 %v4271_v48  ;;  %v4435_v48 = vsub.f32 %v1534_v23, %v4402_v32 }
 0x185   : > { %1372 = vmatprep.mubr.f32.mxu1 %v5540_v0 }
 0x186   : > { %v5538_v7 = vand.u32 4294901760, %v4435_v48 }
 0x188   : > { %1374 = vmatmul.mubr.f32.gmra.mrb[4].mxu1 %v4276_v51  ;;  %v4441_v51 = vrot.slane %v4375_v19, %v1461_v36  ;;  %v4489_v30 = vsub.f32 %v4435_v48, %v5538_v7  ;;  %v5537_v19 = vand.u32 4294901760, %v4466_v8 }
 0x18a   : > { %5620 = vst [vmem:[#allocation11_spill] sm:$0xff] %v4441_v51 }
 0x1c8   : > { %v1402_v17 = vpop.permute.xlu1 %1401  ;;  %v1383_v18 = vpop.permute.xlu0 %1382 }
 0x1cc   : > { %v1419_v24 = vpop.permute.xlu1 %1418  ;;  %v1404_v25 = vpop.permute.xlu0 %1403 }
 0x1cd   : > { %v1407_v28 = vsel %vm1405_vm4, %v1404_v25, %v1402_v17  ;;  %v1406_v34 = vsel %vm1405_vm4, %v1402_v17, %v1404_v25 }
 0x1ce   : > { %v1416_v35 = vmul.f32 %v4387_v22, %v1407_v28  ;;  %v1417_v46 = vmul.f32 %v4399_v31, %v1406_v34  ;;  %v4482_v28 = vrot.slane %v4384_v21, %v1495_v57 }
 0x1d0   : > { %v1436_v38 = vpop.permute.xlu1 %1435  ;;  %v1421_v41 = vpop.permute.xlu0 %1420  ;;  %v1545_v50 = vand.u32 4294901760, %v1416_v35  ;;  %v1543_v1 = vand.u32 4294901760, %v1417_v46  ;;  %5625 = vst [vmem:[#allocation16_spill] sm:$0xff] %v4482_v28 }
 0x1d1   : > { %v1423_v58 = vsel %vm1422_vm5, %v1419_v24, %v1421_v41  ;;  %v1424_v16 = vsel %vm1422_vm5, %v1421_v41, %v1419_v24 }
 0x1d2   : > { %v4468_v9 = vsub.f32 %v1416_v35, %v1545_v50  ;;  %v1434_v17 = vmul.f32 %v4416_v40, %v1423_v58  ;;  %v4492_v33 = vsub.f32 %v1417_v46, %v1543_v1  ;;  %v1433_v35 = vmul.f32 %v4413_v39, %v1424_v16 }
 0x1d4   : > { %v1438_v53 = vpop.permute.xlu0 %1437  ;;  %v1385_v54 = vpop.permute.xlu1 %1384  ;;  %v5539_v34 = vand.u32 4294901760, %v4468_v9  ;;  %v1547_v21 = vand.u32 4294901760, %v1434_v17 }
 0x1d5   : > { %v1440_v59 = vsel %vm1439_vm6, %v1436_v38, %v1438_v53  ;;  %v1389_v60 = vsel %vm1388_vm7, %v1383_v18, %v1385_v54  ;;  %v1390_v61 = vsel %vm1388_vm7, %v1385_v54, %v1383_v18  ;;  %v1441_v2 = vsel %vm1439_vm6, %v1438_v53, %v1436_v38 }
 0x1d6   : > { %v1451_v12 = vmul.f32 %v4424_v44, %v1440_v59  ;;  %v1399_v13 = vmul.f32 %v4428_v45, %v1390_v61  ;;  %v1400_v14 = vmul.f32 %v4432_v47, %v1389_v60  ;;  %v1450_v23 = vmul.f32 %v4421_v43, %v1441_v2 }
 0x1d7   : > { %v4516_v60 = vsub.f32 %v4466_v8, %v5537_v19  ;;  %v1549_v61 = vand.u32 4294901760, %v1433_v35  ;;  %v4526_v16 = vsub.f32 %v4468_v9, %v5539_v34 }
 0x1d8   : > { %v1455_v18 = vpop.permute.xlu0 %1454  ;;  %v1539_v25 = vand.u32 4294901760, %v1400_v14  ;;  %v1541_v26 = vand.u32 4294901760, %v1399_v13  ;;  %v1551_v29 = vand.u32 4294901760, %v1451_v12  ;;  %v1553_v53 = vand.u32 4294901760, %v1450_v23 }
 0x1d9   : > { %v1453_v27 = vpop.permute.xlu1 %1452 }
 0x1da   : > { %v1457_v24 = vsel %vm1456_vm8, %v1453_v27, %v1455_v18  ;;  %v4496_v36 = vpack.c.bf16 %v1545_v50, %v1541_v26  ;;  %v1458_v37 = vsel %vm1456_vm8, %v1455_v18, %v1453_v27  ;;  %v4501_v42 = vpack.c.bf16 %v1543_v1, %v1539_v25 }
 0x1db   : > { %v1467_v38 = vmul.f32 %v4441_v51, %v1457_v24  ;;  %v4503_v54 = vsub.f32 %v1400_v14, %v1539_v25  ;;  %v1468_v46 = vmul.f32 %v4444_v52, %v1458_v37  ;;  %v4510_v58 = vpack.c.bf16 %v1551_v29, %v1547_v21 }
 0x1dc   : > { %v1472_v41 = vpop.permute.xlu0 %1471  ;;  %3516 = vmatprep.subr.bf16.mxu0 %v4501_v42  ;;  %v4518_v1 = vsub.f32 %v1399_v13, %v1541_v26  ;;  %v4528_v18 = vsub.f32 %v1434_v17, %v1547_v21  ;;  %v4532_v26 = vpack.c.bf16 %v1553_v53, %v1549_v61  ;;  %v4534_v24 = vsub.f32 %v1451_v12, %v1551_v29 }
 0x1dd   : > { %v1470_v57 = vpop.permute.xlu1 %1469  ;;  %v1559_v2 = vand.u32 4294901760, %v1468_v46  ;;  %3518 = vmatpush1.bf16.msra.mxu0 %v4496_v36  ;;  %v1561_v25 = vand.u32 4294901760, %v1467_v38  ;;  %v4546_v34 = vsub.f32 %v1450_v23, %v1553_v53 }
 0x1de   : > { %v1474_v50 = vsel %vm1473_vm9, %v1470_v57, %v1472_v41  ;;  %v1475_v14 = vsel %vm1473_vm9, %v1472_v41, %v1470_v57  ;;  %3520 = vmatprep.subr.bf16.mxu0 %v4510_v58  ;;  %v5550_v57 = vand.u32 4294901760, %v4503_v54  ;;  %v5551_v12 = vand.u32 4294901760, %v4518_v1 }
 0x1df   : > { %v1484_v37 = vmul.f32 %v4448_v55, %v1474_v50  ;;  %v1485_v19 = vmul.f32 %v4451_v56, %v1475_v14  ;;  %v4544_v7 = vpack.c.bf16 %v1559_v2, %v4290_v63  ;;  %v4552_v14 = vsub.f32 %v1433_v35, %v1549_v61 }
 0x1e0   : > { %v1489_v27 = vpop.permute.xlu0 %1488  ;;  %v4555_v0 = vpack.c.bf16 %v1561_v25, %v4288_v62  ;;  %v4557_v59 = vsub.f32 %v1468_v46, %v1559_v2  ;;  %v4570_v46 = vld [vmem:[%s5528_s8 + $0x10] ss:$0 sm:$0xff]  ;;  %v1647_v23 = vsub.f32 %v4503_v54, %v5550_v57  ;;  %v1653_v61 = vsub.f32 %v4518_v1, %v5551_v12 }
 0x1e1   : > { %v1487_v41 = vpop.permute.xlu1 %1486  ;;  %3522 = vmatpush1.bf16.msra.mxu0 %v4532_v26  ;;  %v1565_v53 = vand.u32 4294901760, %v1484_v37  ;;  %v1563_v62 = vand.u32 4294901760, %v1485_v19  ;;  %5627 = vst [vmem:[#allocation18_spill] sm:$0xff] %v4570_v46  ;;  %v5629_v57 = vand.u32 4294901760, %v4534_v24 }
 0x1e2   : > { %v1491_v17 = vsel %vm1490_vm10, %v1487_v41, %v1489_v27  ;;  %v1492_v21 = vsel %vm1490_vm10, %v1489_v27, %v1487_v41  ;;  %3524 = vmatprep.subr.bf16.mxu0 %v4544_v7  ;;  %v5564_v52 = vand.u32 4294901760, %v4557_v59 }
 0x1e3   : > { %v1501_v29 = vmul.f32 %v4478_v20, %v1491_v17  ;;  %v1502_v50 = vmul.f32 %v4482_v28, %v1492_v21  ;;  %v4564_v17 = vld [vmem:[%s5528_s8 + $0x18] ss:$0 sm:$0xff]  ;;  %v4583_v28 = vsub.f32 %v1467_v38, %v1561_v25  ;;  %v1683_v13 = vsub.f32 %v4534_v24, %v5629_v57 }
 0x1e4   : > { %v1506_v63 = vpop.permute.xlu0 %1505  ;;  %5626 = vst [vmem:[#allocation17_spill] sm:$0xff] %v4564_v17  ;;  %v4602_v51 = vsub.f32 %v1485_v19, %v1563_v62  ;;  %v5631_v57 = vand.u32 4294901760, %v4546_v34  ;;  %v1654_v19 = vand.u32 4294901760, %v1653_v61 }
 0x1e5   : > { %v1567_v27 = vand.u32 4294901760, %v1502_v50  ;;  %v1569_v41 = vand.u32 4294901760, %v1501_v29  ;;  %v1504_v35 = vpop.permute.xlu1 %1503  ;;  %3526 = vmatpush1.bf16.msra.mxu0 %v4555_v0  ;;  %v1684_v12 = vand.u32 4294901760, %v1683_v13  ;;  %v5633_v13 = vand.u32 4294901760, %v4583_v28 }
 0x1e6   : > { %v1508_v2 = vsel %vm1507_vm11, %v1504_v35, %v1506_v63  ;;  %v1509_v21 = vsel %vm1507_vm11, %v1506_v63, %v1504_v35  ;;  %v5628_v63 = vand.u32 4294901760, %v4492_v33 }
 0x1e7   : > { %v4585_v20 = vpack.c.bf16 %v1569_v41, %v1565_v53  ;;  %v1519_v56 = vmul.f32 %v4564_v17, %v1509_v21  ;;  %v4589_v55 = vpack.c.bf16 %v1567_v27, %v1563_v62  ;;  %v4598_v38 = vsub.f32 %v1502_v50, %v1567_v27 }
 0x1e8   : > { %v1659_v35 = vsub.f32 %v4492_v33, %v5628_v63  ;;  %v1518_v25 = vmul.f32 %v4570_v46, %v1508_v2  ;;  %v1648_v17 = vand.u32 4294901760, %v1647_v23  ;;  %v5630_v63 = vand.u32 4294901760, %v4528_v18 }
 0x1e9   : > { %v4604_v21 = vand.u32 4294901760, %v1519_v56  ;;  %3528 = vmatprep.subr.bf16.mxu0 %v4589_v55  ;;  %v1689_v50 = vsub.f32 %v4546_v34, %v5631_v57  ;;  %v4614_v2 = vsub.f32 %v1501_v29, %v1569_v41  ;;  %v1666_v23 = vand.u32 4294901760, %v4526_v16 }
 0x1ea   : > { %v1671_v44 = vsub.f32 %v4528_v18, %v5630_v63  ;;  %3530 = vmatpush1.bf16.msra.mxu0 %v4585_v20  ;;  %v1660_v62 = vand.u32 4294901760, %v1659_v35  ;;  %v1707_v63 = vsub.f32 %v4557_v59, %v5564_v52  ;;  %v5632_v46 = vand.u32 4294901760, %v4552_v14 }
 0x1eb   : > { %1572 = vmatprep.subr.mxu0 %v4604_v21  ;;  %v4625_v27 = vsub.f32 %v1484_v37, %v1565_v53  ;;  %v4627_v29 = vand.u32 4294901760, %v1518_v25  ;;  %v1730_v41 = vand.u32 4294901760, %v4598_v38  ;;  %v1637_v16 = vand.u32 4294901760, %v4516_v60 }
 0x1ec   : > { %v1677_v57 = vsub.f32 %v4552_v14, %v5632_v46  ;;  %v3531_v61 = vpack.c.bf16 %v1660_v62, %v1648_v17  ;;  %v1672_v43 = vand.u32 4294901760, %v1671_v44  ;;  %v1713_v52 = vsub.f32 %v4583_v28, %v5633_v13 }
 0x1ed   : > { %v3533_v37 = vpack.c.bf16 %v1666_v23, %v1654_v19  ;;  %v1690_v53 = vand.u32 4294901760, %v1689_v50  ;;  %v4638_v46 = vsub.f32 %v1519_v56, %v4604_v21  ;;  %v5634_v44 = vand.u32 4294901760, %v4489_v30 }
 0x1ee   : > { %1574 = vmatpush1.msra.mxu0 %v4627_v29  ;;  %v3535_v17 = vpack.c.bf16 %v1684_v12, %v1672_v43  ;;  %v1708_v62 = vand.u32 4294901760, %v1707_v63  ;;  %v1731_v60 = vsub.f32 %v4598_v38, %v1730_v41  ;;  %v1724_v13 = vand.u32 4294901760, %v4625_v27 }
 0x1ef   : > { %3532 = vmatprep.subr.bf16.mxu0 %v3531_v61  ;;  %1627 = vmatmul.mubr.f32.vlgmr.msra.gmra.mrb[2].mxu0 %v5634_v44  ;;  %v1678_v39 = vand.u32 4294901760, %v1677_v57  ;;  %v5635_v35 = vmov 0.0   ;;  %v5636_v56 = vand.u32 4294901760, %v4602_v51  ;;  %v5637_v30 = vand.u32 4294901760, %v4614_v2 }
 0x1f0   : > { %3534 = vmatpush1.bf16.msra.mxu0 %v3533_v37  ;;  %1632 = vmatprep.mubr.f32.mxu0 %v5635_v35  ;;  %v4654_v12 = vsub.f32 %v1518_v25, %v4627_v29  ;;  %v1714_v23 = vand.u32 4294901760, %v1713_v52  ;;  %v3539_v63 = vpack.c.bf16 %v1708_v62, %v4318_v10  ;;  %v1732_v61 = vand.u32 4294901760, %v1731_v60 }
 0x1f1   : > { %3536 = vmatprep.subr.bf16.mxu0 %v3535_v17  ;;  %v1719_v50 = vsub.f32 %v4602_v51, %v5636_v56  ;;  %v1737_v43 = vsub.f32 %v4614_v2, %v5637_v30  ;;  %v3537_v19 = vpack.c.bf16 %v1690_v53, %v1678_v39  ;;  %v1742_v57 = vand.u32 4294901760, %v4638_v46 }
 0x1f2   : > { %v1725_v37 = vsub.f32 %v4625_v27, %v1724_v13  ;;  %v1748_v25 = vand.u32 4294901760, %v4654_v12  ;;  %v3541_v39 = vpack.c.bf16 %v1714_v23, %v4321_v11  ;;  %v3547_v11 = vpack.c.bf16 %v4492_v33, %v4503_v54 }
 0x1f3   : > { %1638 = vmatmul.mubr.f32.gmra.mrb[4].mxu0 %v1637_v16  ;;  %v1720_v44 = vand.u32 4294901760, %v1719_v50  ;;  %v1738_v52 = vand.u32 4294901760, %v1737_v43  ;;  %v1743_v10 = vsub.f32 %v4638_v46, %v1742_v57  ;;  %v3549_v50 = vpack.c.bf16 %v4468_v9, %v4518_v1 }
 0x1f4   : > { %3538 = vmatpush1.bf16.msra.mxu0 %v3537_v19  ;;  %1798 = vmatprep.mubr.f32.mxu0 %v5635_v35  ;;  %v1726_v16 = vand.u32 4294901760, %v1725_v37  ;;  %v1749_v62 = vsub.f32 %v4654_v12, %v1748_v25  ;;  %v3551_v30 = vpack.c.bf16 %v4534_v24, %v4528_v18  ;;  %v3553_v43 = vpack.c.bf16 %v4546_v34, %v4552_v14 }
 0x1f5   : > { %3540 = vmatprep.subr.bf16.mxu0 %v3539_v63  ;;  %v3543_v53 = vpack.c.bf16 %v1732_v61, %v1720_v44  ;;  %v1744_v60 = vand.u32 4294901760, %v1743_v10  ;;  %v3555_v19 = vpack.c.bf16 %v4557_v59, %v4300_v4  ;;  %v3557_v23 = vpack.c.bf16 %v4583_v28, %v4296_v3 }
 0x1f6   : > { %v3545_v17 = vpack.c.bf16 %v1738_v52, %v1726_v16  ;;  %v1750_v56 = vand.u32 4294901760, %v1749_v62  ;;  %v3559_v63 = vpack.c.bf16 %v4598_v38, %v4602_v51  ;;  %v3561_v61 = vpack.c.bf16 %v4614_v2, %v4625_v27 }
 0x1f7   : > { %v5638_v3 = vand.u32 4294901760, %v4503_v54  ;;  %v5639_v4 = vand.u32 4294901760, %v4492_v33  ;;  %v5640_v44 = vand.u32 4294901760, %v4518_v1  ;;  %v5643_v10 = vand.u32 4294901760, %v4528_v18 }
 0x1f8   : > { %3542 = vmatpush1.bf16.msra.mxu0 %v3541_v39  ;;  %v5641_v39 = vand.u32 4294901760, %v4468_v9  ;;  %v5644_v16 = vand.u32 4294901760, %v4534_v24  ;;  %v5645_v33 = vand.u32 4294901760, %v4552_v14  ;;  %v5646_v54 = vand.u32 4294901760, %v4546_v34 }
 0x1f9   : > { %3544 = vmatprep.subr.bf16.mxu0 %v3543_v53  ;;  %v3579_v37 = vpack.c.bf16 %v5639_v4, %v5638_v3  ;;  %v5642_v53 = vand.u32 4294901760, %v4435_v48  ;;  %v5647_v9 = vand.u32 4294901760, %v4557_v59  ;;  %v5649_v18 = vand.u32 4294901760, %v4583_v28 }
 0x1fa   : > { %v3581_v52 = vpack.c.bf16 %v5641_v39, %v5640_v44  ;;  %v3585_v1 = vpack.c.bf16 %v5646_v54, %v5645_v33  ;;  %v5650_v14 = vand.u32 4294901760, %v4602_v51 }
 0x1fb   : > { %v3587_v62 = vpack.c.bf16 %v5647_v9, %v4309_v6  ;;  %v3589_v24 = vpack.c.bf16 %v5649_v18, %v4305_v5  ;;  %v5651_v6 = vand.u32 4294901760, %v4614_v2  ;;  %v1525_v5 = vpop.permute.xlu1 %1524 }
 0x1fc   : > { %3546 = vmatpush1.bf16.msra.mxu0 %v3545_v17  ;;  %v3583_v17 = vpack.c.bf16 %v5644_v16, %v5643_v10  ;;  %v3591_v34 = vpack.c.bf16 %v1730_v41, %v5650_v14  ;;  %v3387_v10 = vld [vmem:[%s5526_s6 + $0x8] sm:$0xff] }
 0x1fd   : > { %1745 = vmatprep.subr.mxu0 %v1744_v60  ;;  %v2266_v16 = vld [vmem:[%s5525_s5 + $0x8] sm:$0xff] }
 0x200   : > { %1751 = vmatpush1.msra.mxu0 %v1750_v56 }
 0x201   : > { %3548 = vmatprep.subr.bf16.mxu0 %v3547_v11  ;;  %1800 = vmatmul.mubr.f32.vlgmr.msra.gmra.mrb[2].mxu0 %v4402_v32 }
 0x202   : > { %3550 = vmatpush1.bf16.msra.mxu0 %v3549_v50  ;;  %1805 = vmatprep.mubr.f32.mxu0 %v5635_v35 }
 0x203   : > { %3552 = vmatprep.subr.bf16.mxu0 %v3551_v30 }
 0x205   : > { %1807 = vmatmul.mubr.f32.gmra.mrb[4].mxu0 %v4437_v49 }
 0x206   : > { %3554 = vmatpush1.bf16.msra.mxu0 %v3553_v43  ;;  %1913 = vmatprep.mubr.f32.mxu0 %v5635_v35 }
 0x207   : > { %3556 = vmatprep.subr.bf16.mxu0 %v3555_v19 }
 0x20a   : > { %3558 = vmatpush1.bf16.msra.mxu0 %v3557_v23 }
 0x20b   : > { %3560 = vmatprep.subr.bf16.mxu0 %v3559_v63 }
 0x20e   : > { %3562 = vmatpush1.bf16.msra.mxu0 %v3561_v61 }
 0x20f   : > { %1863 = vmatprep.subr.mxu0 %v4638_v46 }
 0x212   : > { %1866 = vmatpush1.msra.mxu0 %v4654_v12 }
 0x213   : > { %3564 = vmatprep.subr.bf16.mxu0 %v4501_v42  ;;  %1916 = vmatmul.mubr.f32.vlgmr.msra.gmra.mrb[2].mxu0 %v4435_v48  ;;  %v5648_v48 = vand.u32 4294901760, %v4466_v8 }
 0x214   : > { %3566 = vmatpush1.bf16.msra.mxu0 %v4496_v36  ;;  %1921 = vmatprep.mubr.f32.mxu0 %v5635_v35 }
 0x215   : > { %3568 = vmatprep.subr.bf16.mxu0 %v4510_v58 }
 0x217   : > { %1924 = vmatmul.mubr.f32.gmra.mrb[4].mxu0 %v4466_v8  ;;  %v3593_v8 = vpack.c.bf16 %v5651_v6, %v1724_v13 }
 0x218   : > { %3570 = vmatpush1.bf16.msra.mxu0 %v4532_v26  ;;  %2012 = vmatprep.mubr.f32.mxu0 %v5635_v35 }
 0x219   : > { %3572 = vmatprep.subr.bf16.mxu0 %v4544_v7 }
 0x21c   : > { %3574 = vmatpush1.bf16.msra.mxu0 %v4555_v0 }
 0x21d   : > { %3576 = vmatprep.subr.bf16.mxu0 %v4589_v55 }
 0x220   : > { %3578 = vmatpush1.bf16.msra.mxu0 %v4585_v20 }
 0x221   : > { %1963 = vmatprep.subr.mxu0 %v4604_v21 }
 0x224   : > { %1965 = vmatpush1.msra.mxu0 %v4627_v29 }
 0x225   : > { %3580 = vmatprep.subr.bf16.mxu0 %v3579_v37  ;;  %2016 = vmatmul.mubr.f32.vlgmr.msra.gmra.mrb[2].mxu0 %v5642_v53  ;;  %v3386_v53 = vld [vmem:[%s5526_s6] sm:$0xff] }
 0x226   : > { %3582 = vmatpush1.bf16.msra.mxu0 %v3581_v52  ;;  %2021 = vmatprep.mubr.f32.mxu0 %v5635_v35 }
 0x227   : > { %3584 = vmatprep.subr.bf16.mxu0 %v3583_v17  ;;  %v2399_v17 = vsel %vm2397_vm12, %v2266_v16, 0 }
 0x228   : > { %v4849_v33 = vand.u32 4294901760, %v2399_v17 }
 0x229   : > { %2025 = vmatmul.mubr.f32.gmra.mrb[4].mxu0 %v5648_v48 }
 0x22a   : > { %3586 = vmatpush1.bf16.msra.mxu0 %v3585_v1  ;;  %2149 = vmatprep.mubr.f32.mxu0 %v5635_v35  ;;  %v4852_v54 = vsub.f32 %v2399_v17, %v4849_v33 }
 0x22b   : > { %3588 = vmatprep.subr.bf16.mxu0 %v3587_v62 }
 0x22c   : > { %5661 = vst [vmem:[#allocation25_spill] sm:$0xff] %v4852_v54  ;;  %v5567_v1 = vand.u32 4294901760, %v4852_v54  ;;  %2936 = vmatprep.mubr.f32.mxu1 %v4852_v54 }
 0x22e   : > { %3590 = vmatpush1.bf16.msra.mxu0 %v3589_v24  ;;  %v2507_v9 = vsub.f32 %v4852_v54, %v5567_v1 }
 0x22f   : > { %3592 = vmatprep.subr.bf16.mxu0 %v3591_v34 }
 0x230   : > { %v2508_v62 = vand.u32 4294901760, %v2507_v9 }
 0x232   : > { %3594 = vmatpush1.bf16.msra.mxu0 %v3593_v8 }
 0x233   : > { %2098 = vmatprep.subr.mxu0 %v1742_v57 }
 0x236   : > { %2102 = vmatpush1.msra.mxu0 %v1748_v25 }
 0x237   : > { %3596 = vmatprep.subr.bf16.mxu0 %v4501_v42  ;;  %2151 = vmatmul.mubr.f32.vlgmr.msra.gmra.mrb[2].mxu0 %v4402_v32  ;;  %v1530_v42 = vpop.permute.xlu0 %1529 }
 0x238   : > { %3598 = vmatpush1.bf16.msra.mxu0 %v4496_v36  ;;  %2156 = vmatprep.mubr.f32.mxu0 %v5635_v35 }
 0x239   : > { %3600 = vmatprep.subr.bf16.mxu0 %v4510_v58 }
 0x23b   : > { %2158 = vmatmul.mubr.f32.gmra.mrb[4].mxu0 %v4437_v49 }
 0x23c   : > { %3602 = vmatpush1.bf16.msra.mxu0 %v4532_v26  ;;  %2246 = vmatprep.mubr.f32.mxu0 %v5635_v35 }
 0x23d   : > { %3604 = vmatprep.subr.bf16.mxu0 %v4544_v7 }
 0x240   : > { %3606 = vmatpush1.bf16.msra.mxu0 %v4555_v0 }
 0x241   : > { %3608 = vmatprep.subr.bf16.mxu0 %v4589_v55 }
 0x244   : > { %3610 = vmatpush1.bf16.msra.mxu0 %v4585_v20 }
 0x245   : > { %2197 = vmatprep.subr.mxu0 %v4604_v21 }
 0x248   : > { %2199 = vmatpush1.msra.mxu0 %v4627_v29 }
 0x249   : > { %2248 = vmatmul.mubr.f32.vlgmr.msra.gmra.mrb[2].mxu0 %v4402_v32 }
 0x24a   : > { %2253 = vmatprep.mubr.f32.mxu0 %v5635_v35 }
 0x24d   : > { %2255 = vmatmul.mubr.f32.gmra.mrb[4].mxu0 %v4437_v49 }
 0x24e   : > { %2509 = vmatprep.mubr.f32.mxu0 %v2508_v62 }
 0x31c   : > { %v2249_v51 = vpop.f32.mrb[2].mxu0 }
 0x31d   : > { %v3839_v28 = vadd.f32 %v2249_v51, %v1525_v5  ;;  %v2251_v7 = vpop.f32.mrb[3].mxu0 }
 0x31e   : > { %v3840_v36 = vadd.f32 %v2251_v7, %v1525_v5 }
 0x31f   : > { %v2261_v0 = vmax.f32 %v3839_v28, 0.0 }
 0x320   : > { %v4763_v55 = vmax.f32 %v3840_v36, 0.0  ;;  %v2256_v20 = vpop.f32.mrb[4].mxu0 }
 0x321   : > { %v3841_v58 = vadd.f32 %v2256_v20, %v1530_v42  ;;  %v2258_v59 = vpop.f32.mrb[5].mxu0  ;;  %2269 = vrot.lane.b32.xlu1 %v2261_v0, %s4078_s29  ;;  %v2438_v26 = vand.u32 4294901760, %v2261_v0 }
 0x322   : > { %v3842_v32 = vadd.f32 %v2258_v59, %v1530_v42  ;;  %v2436_v38 = vand.u32 4294901760, %v4763_v55 }
 0x323   : > { %v2263_v21 = vmax.f32 %v3841_v58, 0.0  ;;  %v4767_v49 = vsub.f32 %v2261_v0, %v2438_v26 }
 0x324   : > { %v2264_v27 = vmax.f32 %v3842_v32, 0.0  ;;  %v4770_v2 = vsub.f32 %v4763_v55, %v2436_v38 }
 0x325   : > { %2271 = vrot.lane.b32.xlu0 %v2263_v21, %s4078_s29  ;;  %2285 = vrot.lane.b32.xlu1 %v2261_v0, %s4077_s26  ;;  %v2442_v29 = vand.u32 4294901760, %v2263_v21  ;;  %v2641_v41 = vand.u32 4294901760, %v4767_v49 }
 0x326   : > { %v2440_v35 = vand.u32 4294901760, %v2264_v27  ;;  %v2635_v46 = vand.u32 4294901760, %v4770_v2 }
 0x327   : > { %v4776_v13 = vpack.c.bf16 %v2442_v29, %v2438_v26  ;;  %v4778_v12 = vsub.f32 %v2263_v21, %v2442_v29  ;;  %v2642_v56 = vsub.f32 %v4767_v49, %v2641_v41 }
 0x328   : > { %v4780_v57 = vpack.c.bf16 %v2440_v35, %v2436_v38  ;;  %v4782_v25 = vsub.f32 %v2264_v27, %v2440_v35  ;;  %v2636_v30 = vsub.f32 %v4770_v2, %v2635_v46  ;;  %v2265_v35 = vld [vmem:[%s5525_s5] sm:$0xff] }
 0x329   : > { %5652 = vst [vmem:[#allocation19_spill] sm:$0xff] %v4776_v13  ;;  %2287 = vrot.lane.b32.xlu0 %v2263_v21, %s4077_s26  ;;  %2301 = vrot.lane.b32.xlu1 %v2261_v0, %s4079_s23  ;;  %v2653_v11 = vand.u32 4294901760, %v4778_v12  ;;  %v2643_v3 = vand.u32 4294901760, %v2642_v56 }
 0x32a   : > { %5653 = vst [vmem:[#allocation20_spill] sm:$0xff] %v4780_v57  ;;  %v2647_v43 = vand.u32 4294901760, %v4782_v25  ;;  %v2637_v37 = vand.u32 4294901760, %v2636_v30 }
 0x32b   : > { %v2654_v19 = vsub.f32 %v4778_v12, %v2653_v11  ;;  %v4795_v23 = vpack.c.bf16 %v2653_v11, %v2641_v41 }
 0x32c   : > { %v2648_v63 = vsub.f32 %v4782_v25, %v2647_v43  ;;  %v4798_v61 = vpack.c.bf16 %v2647_v43, %v2635_v46 }
 0x32d   : > { %5654 = vst [vmem:[#allocation21_spill] sm:$0xff] %v4795_v23  ;;  %2303 = vrot.lane.b32.xlu0 %v2263_v21, %s4079_s23  ;;  %2317 = vrot.lane.b32.xlu1 %v2261_v0, %s4080_s28  ;;  %v2655_v4 = vand.u32 4294901760, %v2654_v19 }
 0x32e   : > { %5655 = vst [vmem:[#allocation22_spill] sm:$0xff] %v4798_v61  ;;  %v2649_v44 = vand.u32 4294901760, %v2648_v63 }
 0x32f   : > { %v4802_v39 = vpack.c.bf16 %v2655_v4, %v2643_v3  ;;  %v4898_v3 = vand.u32 4294901760, %v2265_v35 }
 0x330   : > { %v4804_v52 = vpack.c.bf16 %v2649_v44, %v2637_v37 }
 0x331   : > { %5656 = vst [vmem:[#allocation23_spill] sm:$0xff] %v4802_v39  ;;  %2319 = vrot.lane.b32.xlu0 %v2263_v21, %s4080_s28  ;;  %2333 = vrot.lane.b32.xlu1 %v2261_v0, %s4081_s14  ;;  %5662 = vst [vmem:[#allocation26_spill] sm:$0xff] %v4898_v3  ;;  %v5679_v39 = vld [vmem:[#allocation13_spill] sm:$0xff] }
 0x332   : > { %5657 = vst [vmem:[#allocation24_spill] sm:$0xff] %v4804_v52 }
 0x335   : > { %2335 = vrot.lane.b32.xlu0 %v2263_v21, %s4081_s14  ;;  %2349 = vrot.lane.b32.xlu1 %v2261_v0, %s5658_s16 }
 0x339   : > { %2351 = vrot.lane.b32.xlu0 %v2263_v21, %s5658_s16  ;;  %2365 = vrot.lane.b32.xlu1 %v2261_v0, %s5659_s17 }
 0x33d   : > { %2367 = vrot.lane.b32.xlu0 %v2263_v21, %s5659_s17  ;;  %2273 = vrot.lane.b32.xlu1 %v4763_v55, %s4078_s29 }
 0x341   : > { %2275 = vrot.lane.b32.xlu0 %v2264_v27, %s4078_s29  ;;  %2289 = vrot.lane.b32.xlu1 %v4763_v55, %s4077_s26  ;;  %s4085_s29 = smov [#allocation5]  }
 0x345   : > { %2291 = vrot.lane.b32.xlu0 %v2264_v27, %s4077_s26  ;;  %2305 = vrot.lane.b32.xlu1 %v4763_v55, %s4079_s23 }
 0x349   : > { %2307 = vrot.lane.b32.xlu0 %v2264_v27, %s4079_s23  ;;  %2321 = vrot.lane.b32.xlu1 %v4763_v55, %s4080_s28  ;;  %s4010_s23 = sshll.u32 %s4085_s29, 4  ;;  %s4011_s23 = int_to_ptr.vmem [resolvable:$false] %s4010_s23 }
 0x34d   : > { %2323 = vrot.lane.b32.xlu0 %v2264_v27, %s4080_s28  ;;  %2381 = vrot.lane.b32.xlu1 %v2261_v0, %s5660_s19  ;;  %s3505_s28 = sshll.u32 %s4243_s24, 5 }
 0x351   : > { %2383 = vrot.lane.b32.xlu0 %v2263_v21, %s5660_s19  ;;  %2337 = vrot.lane.b32.xlu1 %v4763_v55, %s4081_s14 }
 0x355   : > { %2339 = vrot.lane.b32.xlu0 %v2264_v27, %s4081_s14  ;;  %2353 = vrot.lane.b32.xlu1 %v4763_v55, %s5658_s16  ;;  %s348_s14 = scalar_lea.vmem [#allocation5], %s3505_s28  ;;  %s4012_s28 = scalar_lea.vmem %s4011_s23, 1024 }
 0x356   : > { %s3424_s25 = sshll.u32 %s348_s14, 4  ;;  %s5470_s25 = int_to_ptr.vmem [resolvable:$true] %s3424_s25 }
 0x357   : > { %s4006_s13 = scalar_lea.vmem %s5470_s25, 512  ;;  %p4013_p7 = scmp.lt.s32.totalorder %s5470_s25, %s4011_s23 }
 0x358   : > { %p4007_p6 = scmp.ne.s32.totalorder %s5470_s25, %s4006_s13  ;;  %p4014_p10 = scmp.lt.s32.totalorder %s4012_s28, %s4006_s13 }
 0x359   : > { %2355 = vrot.lane.b32.xlu0 %v2264_v27, %s5658_s16  ;;  %2369 = vrot.lane.b32.xlu1 %v4763_v55, %s5659_s17 }
 0x35a   : > { %p4008_p12 = pnand %p4007_p6, %p5779_p11  ;;  %p4015_p2 = por %p4014_p10, %p4013_p7 }
 0x35c   : > { %p4009_p13 = pneg %p4008_p12 }
 0x35d   : > { %2371 = vrot.lane.b32.xlu0 %v2264_v27, %s5659_s17  ;;  %2385 = vrot.lane.b32.xlu1 %v4763_v55, %s5660_s19  ;;  %s5475_s17 = scalar_lea.hbm %s5529_s9, %s3514_s27 }
 0x35e   : > { %p4016_p4 = pnand %p4015_p2, %p4009_p13 }
 0x361   : > { %2387 = vrot.lane.b32.xlu0 %v2264_v27, %s5660_s19  ;;  %3390 = vperm.xlu1 %3966, %v3386_v53   ;;  %s3411_s19 = scalar_lea.sflag [#allocation4], %s4243_s24 }
 0x365   : > { %3395 = vperm.xlu0 %3965, %v3387_v10  }
 0x393   : > { %v2270_v48 = vpop.permute.xlu1 %2269 }
 0x397   : > { %v2272_v18 = vpop.permute.xlu0 %2271  ;;  %v2286_v24 = vpop.permute.xlu1 %2285 }
 0x39b   : > { %v2288_v14 = vpop.permute.xlu0 %2287  ;;  %v2302_v34 = vpop.permute.xlu1 %2301 }
 0x39f   : > { %v2304_v6 = vpop.permute.xlu0 %2303  ;;  %v4859_v8 = vpop.permute.xlu1 %2317 }
 0x3a3   : > { %v4861_v5 = vpop.permute.xlu0 %2319  ;;  %v4863_v51 = vpop.permute.xlu1 %2333 }
 0x3a7   : > { %v4865_v28 = vpop.permute.xlu0 %2335  ;;  %v4867_v7 = vpop.permute.xlu1 %2349 }
 0x3ab   : > { %v4869_v36 = vpop.permute.xlu0 %2351  ;;  %v4871_v0 = vpop.permute.xlu1 %2365 }
 0x3af   : > { %v4873_v42 = vpop.permute.xlu0 %2367  ;;  %v2274_v55 = vpop.permute.xlu1 %2273 }
 0x3b0   : > { %v2279_v20 = vsel %vm1388_vm7, %v2274_v55, %v2270_v48  ;;  %v2277_v58 = vsel %vm1388_vm7, %v2270_v48, %v2274_v55 }
 0x3b1   : > { %v2281_v32 = vmul.f32 %v2279_v20, %v4428_v45  ;;  %v2282_v27 = vmul.f32 %v2277_v58, %v4432_v47 }
 0x3b3   : > { %v2276_v59 = vpop.permute.xlu0 %2275  ;;  %v2290_v26 = vpop.permute.xlu1 %2289  ;;  %v2406_v63 = vand.u32 4294901760, %v2281_v32  ;;  %v2404_v4 = vand.u32 4294901760, %v2282_v27 }
 0x3b4   : > { %v2278_v38 = vsel %vm1388_vm7, %v2272_v18, %v2276_v59  ;;  %v2280_v21 = vsel %vm1388_vm7, %v2276_v59, %v2272_v18  ;;  %v2293_v46 = vsel %vm1405_vm4, %v2286_v24, %v2290_v26  ;;  %v2295_v30 = vsel %vm1405_vm4, %v2290_v26, %v2286_v24 }
 0x3b5   : > { %v2283_v29 = vmul.f32 %v2280_v21, %v4428_v45  ;;  %v2284_v41 = vmul.f32 %v2278_v38, %v4432_v47  ;;  %v2298_v37 = vmul.f32 %v2293_v46, %v4399_v31  ;;  %v2297_v53 = vmul.f32 %v2295_v30, %v4387_v22 }
 0x3b6   : > { %v4913_v24 = vsub.f32 %v2265_v35, %v4898_v3 }
 0x3b7   : > { %v2408_v56 = vand.u32 4294901760, %v2284_v41  ;;  %v2410_v11 = vand.u32 4294901760, %v2283_v29  ;;  %v2292_v43 = vpop.permute.xlu0 %2291  ;;  %v2306_v19 = vpop.permute.xlu1 %2305  ;;  %v2412_v55 = vand.u32 4294901760, %v2298_v37  ;;  %v2414_v58 = vand.u32 4294901760, %v2297_v53 }
 0x3b8   : > { %v2294_v45 = vsel %vm1405_vm4, %v2288_v14, %v2292_v43  ;;  %v2296_v47 = vsel %vm1405_vm4, %v2292_v43, %v2288_v14  ;;  %v2309_v18 = vsel %vm1422_vm5, %v2302_v34, %v2306_v19  ;;  %v4915_v14 = vsub.f32 %v2282_v27, %v2404_v4  ;;  %v5664_v27 = vld [vmem:[#allocation8_spill] sm:$0xff] }
 0x3b9   : > { %v4901_v44 = vpack.c.bf16 %v2410_v11, %v2406_v63  ;;  %v2300_v10 = vmul.f32 %v2294_v45, %v4399_v31  ;;  %v2299_v16 = vmul.f32 %v2296_v47, %v4387_v22  ;;  %v4906_v9 = vpack.c.bf16 %v2408_v56, %v2404_v4 }
 0x3ba   : > { %v4908_v48 = vsub.f32 %v2284_v41, %v2408_v56  ;;  %v4922_v20 = vsub.f32 %v2283_v29, %v2410_v11  ;;  %v2311_v26 = vsel %vm1422_vm5, %v2306_v19, %v2302_v34  ;;  %v2314_v21 = vmul.f32 %v2309_v18, %v4416_v40 }
 0x3bb   : > { %v2308_v17 = vpop.permute.xlu0 %2307  ;;  %v2322_v62 = vpop.permute.xlu1 %2321  ;;  %3612 = vmatprep.subr.bf16.mxu0 %v4906_v9  ;;  %v2416_v59 = vand.u32 4294901760, %v2300_v10  ;;  %v2418_v38 = vand.u32 4294901760, %v2299_v16  ;;  %v4932_v56 = vsub.f32 %v2281_v32, %v2406_v63  ;;  %v2313_v11 = vmul.f32 %v2311_v26, %v5664_v27 }
 0x3bc   : > { %v2310_v31 = vsel %vm1422_vm5, %v2304_v6, %v2308_v17  ;;  %v2312_v22 = vsel %vm1422_vm5, %v2308_v17, %v2304_v6  ;;  %5663 = vst [vmem:[#allocation27_spill] sm:$0xff] %v4922_v20  ;;  %3614 = vmatpush1.bf16.msra.mxu0 %v4901_v44  ;;  %v3683_v29 = vpack.c.bf16 %v4908_v48, %v4915_v14  ;;  %v2420_v4 = vand.u32 4294901760, %v2314_v21 }
 0x3bd   : > { %v2315_v41 = vmul.f32 %v2312_v22, %v5664_v27  ;;  %v2316_v35 = vmul.f32 %v2310_v31, %v4416_v40  ;;  %5665 = vst [vmem:[#allocation8_spill] sm:$0xff] %v4932_v56  ;;  %v2325_v34 = vsel %vm1439_vm6, %v4859_v8, %v2322_v62  ;;  %v2327_v30 = vsel %vm1439_vm6, %v2322_v62, %v4859_v8  ;;  %v2268_v8 = vld [vmem:[%s5525_s5 + $0x18] sm:$0xff]  ;;  %v5669_v62 = vld [vmem:[#allocation10_spill] sm:$0xff] }
 0x3be   : > { %v5568_v40 = vand.u32 4294901760, %v4913_v24  ;;  %v4944_v43 = vsub.f32 %v2298_v37, %v2412_v55  ;;  %v4946_v19 = vsub.f32 %v2300_v10, %v2416_v59  ;;  %3684 = vmatprep.subr.bf16.mxu1 %v3683_v29  ;;  %v3685_v63 = vpack.c.bf16 %v4922_v20, %v4932_v56  ;;  %v5668_v37 = vld [vmem:[#allocation9_spill] sm:$0xff] }
 0x3bf   : > { %v2324_v46 = vpop.permute.xlu0 %2323  ;;  %v4930_v6 = vpop.permute.xlu1 %2381  ;;  %v2424_v32 = vand.u32 4294901760, %v2316_v35  ;;  %v4950_v45 = vsub.f32 %v2297_v53, %v2414_v58  ;;  %v4952_v47 = vsub.f32 %v2299_v16, %v2418_v38  ;;  %v2426_v17 = vand.u32 4294901760, %v2315_v41 }
 0x3c0   : > { %5666 = vst [vmem:[#allocation28_spill] sm:$0xff] %v4944_v43  ;;  %5667 = vst [vmem:[#allocation29_spill] sm:$0xff] %v4946_v19  ;;  %v2329_v10 = vmul.f32 %v2327_v30, %v5668_v37  ;;  %v2330_v31 = vmul.f32 %v2325_v34, %v5669_v62  ;;  %3686 = vmatpush1.bf16.msra.mxu1 %v3685_v63  ;;  %v2326_v53 = vsel %vm1439_vm6, %v4861_v5, %v2324_v46 }
 0x3c1   : > { %v2328_v16 = vsel %vm1439_vm6, %v2324_v46, %v4861_v5  ;;  %v4967_v26 = vpack.c.bf16 %v2418_v38, %v2414_v58  ;;  %v2422_v27 = vand.u32 4294901760, %v2313_v11  ;;  %v2332_v1 = vmul.f32 %v2326_v53, %v5669_v62 }
 0x3c2   : > { %v2331_v29 = vmul.f32 %v2328_v16, %v5668_v37  ;;  %v4971_v30 = vsub.f32 %v2316_v35, %v2424_v32  ;;  %v4973_v34 = vpack.c.bf16 %v2416_v59, %v2412_v55  ;;  %v3687_v63 = vpack.c.bf16 %v4946_v19, %v4944_v43 }
 0x3c3   : > { %v4954_v18 = vpop.permute.xlu0 %2383  ;;  %v2338_v22 = vpop.permute.xlu1 %2337  ;;  %v2402_v60 = vsel %vm2397_vm12, %v2268_v8, 0  ;;  %v4978_v50 = vsub.f32 %v2315_v41, %v2426_v17  ;;  %v2432_v5 = vand.u32 4294901760, %v2332_v1  ;;  %v3689_v58 = vpack.c.bf16 %v4952_v47, %v4950_v45  ;;  %v2267_v41 = vld [vmem:[%s5525_s5 + $0x10] sm:$0xff] }
 0x3c4   : > { %5670 = vst [vmem:[#allocation9_spill] sm:$0xff] %v4971_v30  ;;  %v2434_v46 = vand.u32 4294901760, %v2331_v29  ;;  %v4982_v37 = vsub.f32 %v2314_v21, %v2420_v4  ;;  %v2428_v62 = vand.u32 4294901760, %v2330_v31  ;;  %v2430_v35 = vand.u32 4294901760, %v2329_v10  ;;  %3616 = vmatprep.subr.bf16.mxu0 %v4973_v34  ;;  %3688 = vmatprep.subr.bf16.mxu1 %v3687_v63 }
 0x3c5   : > { %v4985_v55 = vpack.c.bf16 %v2424_v32, %v2420_v4  ;;  %v4987_v59 = vsub.f32 %v2313_v11, %v2422_v27  ;;  %v4989_v8 = vpack.c.bf16 %v2426_v17, %v2422_v27  ;;  %3618 = vmatpush1.bf16.msra.mxu0 %v4967_v26  ;;  %3690 = vmatpush1.bf16.msra.mxu1 %v3689_v58  ;;  %v5006_v17 = vand.u32 4294901760, %v2402_v60 }
 0x3c6   : > { %v2341_v21 = vsel %vm1456_vm8, %v4863_v51, %v2338_v22  ;;  %v3691_v32 = vpack.c.bf16 %v4971_v30, %v4982_v37  ;;  %v5004_v4 = vsub.f32 %v4913_v24, %v5568_v40  ;;  %v5008_v53 = vsub.f32 %v2332_v1, %v2432_v5 }
 0x3c7   : > { %v2340_v38 = vpop.permute.xlu0 %2339  ;;  %5671 = vst [vmem:[#allocation10_spill] sm:$0xff] %v4985_v55  ;;  %5672 = vst [vmem:[#allocation30_spill] sm:$0xff] %v4989_v8  ;;  %3620 = vmatprep.subr.bf16.mxu0 %v4985_v55  ;;  %v2354_v11 = vpop.permute.xlu1 %2353  ;;  %v5010_v16 = vsub.f32 %v2331_v29, %v2434_v46  ;;  %v2343_v27 = vsel %vm1456_vm8, %v2338_v22, %v4863_v51  ;;  %v3693_v63 = vpack.c.bf16 %v4978_v50, %v4987_v59  ;;  %v5678_v29 = vld [vmem:[#allocation12_spill] sm:$0xff] }
 0x3c8   : > { %5673 = vst [vmem:[#allocation31_spill] sm:$0xff] %v5006_v17  ;;  %v5017_v58 = vsub.f32 %v2330_v31, %v2428_v62  ;;  %v5019_v23 = vsub.f32 %v2329_v10, %v2430_v35  ;;  %v5021_v61 = vpack.c.bf16 %v2434_v46, %v2430_v35  ;;  %3692 = vmatprep.subr.bf16.mxu1 %v3691_v32  ;;  %v5023_v3 = vand.u32 4294901760, %v2267_v41  ;;  %v5677_v10 = vld [vmem:[#allocation11_spill] sm:$0xff] }
 0x3c9   : > { %3622 = vmatpush1.bf16.msra.mxu0 %v4989_v8  ;;  %3694 = vmatpush1.bf16.msra.mxu1 %v3693_v63  ;;  %v2342_v1 = vsel %vm1456_vm8, %v4865_v28, %v2340_v38  ;;  %v2344_v51 = vsel %vm1456_vm8, %v2340_v38, %v4865_v28  ;;  %v5032_v31 = vpack.c.bf16 %v2432_v5, %v2428_v62 }
 0x3ca   : > { %5674 = vst [vmem:[#allocation32_spill] sm:$0xff] %v5021_v61  ;;  %5675 = vst [vmem:[#allocation33_spill] sm:$0xff] %v5023_v3  ;;  %v2345_v22 = vmul.f32 %v2341_v21, %v5677_v10  ;;  %v5036_v46 = vmul.f32 %v2343_v27, %v5678_v29  ;;  %v2357_v35 = vsel %vm1473_vm9, %v4867_v7, %v2354_v11 }
 0x3cb   : > { %v2356_v40 = vpop.permute.xlu0 %2355  ;;  %5676 = vst [vmem:[#allocation34_spill] sm:$0xff] %v5032_v31  ;;  %3624 = vmatprep.subr.bf16.mxu0 %v5032_v31  ;;  %v2359_v32 = vsel %vm1473_vm9, %v2354_v11, %v4867_v7  ;;  %v3695_v28 = vpack.c.bf16 %v5008_v53, %v5017_v58  ;;  %v3697_v5 = vpack.c.bf16 %v5010_v16, %v5019_v23  ;;  %v2370_v27 = vpop.permute.xlu1 %2369 }
 0x3cc   : > { %v5050_v38 = vsub.f32 %v2402_v60, %v5006_v17  ;;  %v2347_v62 = vmul.f32 %v2342_v1, %v5677_v10  ;;  %v2348_v21 = vmul.f32 %v2344_v51, %v5678_v29  ;;  %v5055_v63 = vsub.f32 %v2267_v41, %v5023_v3  ;;  %v5680_v41 = vld [vmem:[#allocation14_spill] sm:$0xff] }
 0x3cd   : > { %v2361_v52 = vmul.f32 %v2357_v35, %v5679_v39  ;;  %3626 = vmatpush1.bf16.msra.mxu0 %v5021_v61  ;;  %3696 = vmatprep.subr.bf16.mxu1 %v3695_v28  ;;  %v2358_v7 = vsel %vm1473_vm9, %v4869_v36, %v2356_v40  ;;  %v2360_v60 = vsel %vm1473_vm9, %v2356_v40, %v4869_v36  ;;  %v2444_v1 = vand.u32 4294901760, %v5036_v46 }
 0x3ce   : > { %v2446_v51 = vand.u32 4294901760, %v2345_v22  ;;  %v5068_v10 = vmul.f32 %v2359_v32, %v5680_v41  ;;  %3628 = vmatprep.subr.bf16.mxu0 %v4780_v57  ;;  %3698 = vmatpush1.bf16.msra.mxu1 %v3697_v5  ;;  %v5072_v29 = vmul.f32 %v2360_v60, %v5680_v41  ;;  %v2363_v3 = vmul.f32 %v2358_v7, %v5679_v39  ;;  %v5682_v41 = vld [vmem:[#allocation15_spill] sm:$0xff] }
 0x3cf   : > { %v2372_v35 = vpop.permute.xlu0 %2371  ;;  %v2373_v36 = vsel %vm1490_vm10, %v4871_v0, %v2370_v27  ;;  %v5681_v40 = vpack.c.bf16 %v4782_v25, %v4770_v2  ;;  %v2448_v11 = vand.u32 4294901760, %v2348_v21  ;;  %v2450_v5 = vand.u32 4294901760, %v2347_v62  ;;  %v2386_v39 = vpop.permute.xlu1 %2385 }
 0x3d0   : > { %v2375_v60 = vsel %vm1490_vm10, %v2370_v27, %v4871_v0  ;;  %v2377_v28 = vmul.f32 %v2373_v36, %v5682_v41  ;;  %v2454_v7 = vand.u32 4294901760, %v2361_v52  ;;  %v2374_v2 = vsel %vm1490_vm10, %v4873_v42, %v2372_v35 }
 0x3d1   : > { %3700 = vmatprep.subr.bf16.mxu1 %v5681_v40  ;;  %3630 = vmatpush1.bf16.msra.mxu0 %v4776_v13  ;;  %v5094_v40 = vsub.f32 %v5036_v46, %v2444_v1  ;;  %v5096_v32 = vsub.f32 %v2345_v22, %v2446_v51  ;;  %v2452_v0 = vand.u32 4294901760, %v5068_v10  ;;  %v2456_v27 = vand.u32 4294901760, %v5072_v29  ;;  %v5684_v13 = vld [vmem:[#allocation16_spill] sm:$0xff] }
 0x3d2   : > { %v5683_v36 = vpack.c.bf16 %v4778_v12, %v4767_v49  ;;  %v2458_v17 = vand.u32 4294901760, %v2363_v3  ;;  %v2378_v57 = vmul.f32 %v2375_v60, %v5684_v13  ;;  %v2376_v25 = vsel %vm1490_vm10, %v2372_v35, %v4873_v42  ;;  %v5686_v60 = vld [vmem:[#allocation17_spill] sm:$0xff] }
 0x3d3   : > { %v2379_v46 = vmul.f32 %v2374_v2, %v5682_v41  ;;  %v5108_v22 = vpack.c.bf16 %v2450_v5, %v2446_v51  ;;  %v5110_v61 = vsub.f32 %v2348_v21, %v2448_v11  ;;  %v2462_v31 = vand.u32 4294901760, %v2377_v28 }
 0x3d4   : > { %3702 = vmatpush1.bf16.msra.mxu1 %v5683_v36  ;;  %v2380_v8 = vmul.f32 %v2376_v25, %v5684_v13  ;;  %v5113_v54 = vsub.f32 %v2347_v62, %v2450_v5  ;;  %v5115_v49 = vsub.f32 %v2361_v52, %v2454_v7  ;;  %v2389_v12 = vsel %vm1507_vm11, %v4930_v6, %v2386_v39  ;;  %v2388_v13 = vpop.permute.xlu0 %2387 }
 0x3d5   : > { %5685 = vst [vmem:[#allocation11_spill] sm:$0xff] %v5108_v22  ;;  %v2391_v42 = vsel %vm1507_vm11, %v2386_v39, %v4930_v6  ;;  %v5124_v51 = vsub.f32 %v5068_v10, %v2452_v0  ;;  %v2466_v35 = vand.u32 4294901760, %v2379_v46  ;;  %v5127_v62 = vpack.c.bf16 %v2458_v17, %v2454_v7  ;;  %v5688_v6 = vld [vmem:[#allocation18_spill] sm:$0xff] }
 0x3d6   : > { %v2464_v21 = vand.u32 4294901760, %v2380_v8  ;;  %v2394_v41 = vmul.f32 %v5686_v60, %v2391_v42  ;;  %v5130_v52 = vsub.f32 %v5072_v29, %v2456_v27  ;;  %v2460_v5 = vand.u32 4294901760, %v2378_v57 }
 0x3d7   : > { %v5132_v2 = vpack.c.bf16 %v2448_v11, %v2444_v1  ;;  %v5134_v25 = vsub.f32 %v2363_v3, %v2458_v17  ;;  %v5136_v36 = vsub.f32 %v2377_v28, %v2462_v31  ;;  %v2393_v10 = vmul.f32 %v5688_v6, %v2389_v12  ;;  %v5157_v28 = vpop.f32.mrb[2].mxu1 }
 0x3d8   : > { %v3703_v39 = vpack.c.bf16 %v5110_v61, %v5094_v40  ;;  %v5141_v55 = vsub.f32 %v2380_v8, %v2464_v21  ;;  %v2468_v42 = vand.u32 4294901760, %v2394_v41  ;;  %v3705_v29 = vpack.c.bf16 %v5113_v54, %v5096_v32  ;;  %5689 = vst [vmem:[#allocation13_spill] sm:$0xff] %v5157_v28 }
 0x3d9   : > { %5687 = vst [vmem:[#allocation12_spill] sm:$0xff] %v5132_v2  ;;  %3632 = vmatprep.subr.bf16.mxu0 %v5132_v2  ;;  %v2390_v3 = vsel %vm1507_vm11, %v4954_v18, %v2388_v13  ;;  %v5149_v17 = vsub.f32 %v2379_v46, %v2466_v35  ;;  %v2392_v8 = vsel %vm1507_vm11, %v2388_v13, %v4954_v18  ;;  %v5592_v1 = vand.u32 4294901760, %v4908_v48 }
 0x3da   : > { %3634 = vmatpush1.bf16.msra.mxu0 %v5108_v22  ;;  %3704 = vmatprep.subr.bf16.mxu1 %v3703_v39  ;;  %v2395_v11 = vmul.f32 %v5688_v6, %v2390_v3  ;;  %v5159_v7 = vsub.f32 %v2378_v57, %v2460_v5  ;;  %v5161_v12 = vpack.c.bf16 %v2466_v35, %v2462_v31  ;;  %v5166_v39 = vpop.f32.mrb[3].mxu1  ;;  %v2470_v31 = vand.u32 4294901760, %v2393_v10 }
 0x3db   : > { %3706 = vmatpush1.bf16.msra.mxu1 %v3705_v29  ;;  %v2396_v46 = vmul.f32 %v5686_v60, %v2392_v8  ;;  %v5164_v2 = vpack.c.bf16 %v2456_v27, %v2452_v0  ;;  %5690 = vst [vmem:[#allocation14_spill] sm:$0xff] %v5166_v39  ;;  %v3707_v15 = vpack.c.bf16 %v5130_v52, %v5124_v51  ;;  %v5174_v57 = vpop.f32.mrb[4].mxu1 }
 0x3dc   : > { %v2474_v22 = vand.u32 4294901760, %v2395_v11  ;;  %v3709_v18 = vpack.c.bf16 %v5134_v25, %v5115_v49  ;;  %v5172_v13 = vpack.c.bf16 %v2464_v21, %v2460_v5  ;;  %5691 = vst [vmem:[#allocation15_spill] sm:$0xff] %v5174_v57  ;;  %v5176_v35 = vsub.f32 %v2394_v41, %v2468_v42  ;;  %v5181_v27 = vpop.f32.mrb[5].mxu1 }
 0x3dd   : > { %v2472_v6 = vand.u32 4294901760, %v2396_v46  ;;  %3636 = vmatprep.subr.bf16.mxu0 %v5164_v2  ;;  %v3711_v0 = vpack.c.bf16 %v5141_v55, %v5159_v7  ;;  %5692 = vst [vmem:[#allocation16_spill] sm:$0xff] %v5181_v27  ;;  %3708 = vmatprep.subr.bf16.mxu1 %v3707_v15  ;;  %v3713_v21 = vpack.c.bf16 %v5149_v17, %v5136_v36  ;;  %v5693_v5 = vand.u32 4294901760, %v4915_v14 }
 0x3de   : > { %v5183_v60 = vsub.f32 %v2395_v11, %v2474_v22  ;;  %3638 = vmatpush1.bf16.msra.mxu0 %v5127_v62  ;;  %v2552_v11 = vsub.f32 %v4908_v48, %v5592_v1  ;;  %v5593_v15 = vand.u32 4294901760, %v4946_v19  ;;  %v5694_v27 = vand.u32 4294901760, %v4922_v20 }
 0x3df   : > { %v2540_v41 = vsub.f32 %v4915_v14, %v5693_v5  ;;  %v5192_v3 = vsub.f32 %v2396_v46, %v2472_v6  ;;  %3710 = vmatpush1.bf16.msra.mxu1 %v3709_v18  ;;  %3640 = vmatprep.subr.bf16.mxu0 %v5172_v13  ;;  %v5195_v8 = vpack.c.bf16 %v2472_v6, %v2468_v42  ;;  %v5695_v46 = vand.u32 4294901760, %v5050_v38 }
 0x3e0   : > { %v2558_v57 = vsub.f32 %v4922_v20, %v5694_v27  ;;  %3712 = vmatprep.subr.bf16.mxu1 %v3711_v0  ;;  %v5209_v6 = vsub.f32 %v2393_v10, %v2470_v31  ;;  %v2553_v29 = vand.u32 4294901760, %v2552_v11  ;;  %v2576_v39 = vsub.f32 %v4946_v19, %v5593_v15 }
 0x3e1   : > { %v2523_v18 = vsub.f32 %v5050_v38, %v5695_v46  ;;  %v3715_v1 = vpack.c.bf16 %v5192_v3, %v5176_v35  ;;  %v5696_v27 = vand.u32 4294901760, %v4932_v56  ;;  %v5220_v28 = vpack.c.bf16 %v2474_v22, %v2470_v31 }
 0x3e2   : > { %3642 = vmatpush1.bf16.msra.mxu0 %v5161_v12  ;;  %v2541_v10 = vand.u32 4294901760, %v2540_v41  ;;  %v3717_v11 = vpack.c.bf16 %v5183_v60, %v5209_v6  ;;  %v5697_v46 = vand.u32 4294901760, %v4944_v43  ;;  %v5698_v22 = vand.u32 4294901760, %v4952_v47 }
 0x3e3   : > { %v2546_v0 = vsub.f32 %v4932_v56, %v5696_v27  ;;  %3714 = vmatpush1.bf16.msra.mxu1 %v3713_v21  ;;  %3644 = vmatprep.subr.bf16.mxu0 %v5195_v8  ;;  %v5598_v27 = vand.u32 4294901760, %v4971_v30  ;;  %v2559_v21 = vand.u32 4294901760, %v2558_v57  ;;  %v5699_v5 = vand.u32 4294901760, %v5055_v63 }
 0x3e4   : > { %v2564_v15 = vsub.f32 %v4944_v43, %v5697_v46  ;;  %v2582_v31 = vsub.f32 %v4952_v47, %v5698_v22  ;;  %3716 = vmatprep.subr.bf16.mxu1 %v3715_v1  ;;  %v3647_v20 = vpack.c.bf16 %v2553_v29, %v2541_v10  ;;  %v2577_v56 = vand.u32 4294901760, %v2576_v39 }
 0x3e5   : > { %v2529_v19 = vsub.f32 %v5055_v63, %v5699_v5  ;;  %v2600_v46 = vsub.f32 %v4971_v30, %v5598_v27  ;;  %v5700_v43 = vand.u32 4294901760, %v4950_v45  ;;  %v2547_v1 = vand.u32 4294901760, %v2546_v0 }
 0x3e6   : > { %3646 = vmatpush1.bf16.msra.mxu0 %v5220_v28  ;;  %v2565_v57 = vand.u32 4294901760, %v2564_v15  ;;  %v5701_v39 = vand.u32 4294901760, %v4982_v37  ;;  %v2524_v10 = vand.u32 4294901760, %v2523_v18  ;;  %v5702_v27 = vand.u32 4294901760, %v4978_v50 }
 0x3e7   : > { %v2570_v22 = vsub.f32 %v4950_v45, %v5700_v43  ;;  %3648 = vmatprep.subr.bf16.mxu0 %v3647_v20  ;;  %3718 = vmatpush1.bf16.msra.mxu1 %v3717_v11  ;;  %v3649_v41 = vpack.c.bf16 %v2559_v21, %v2547_v1  ;;  %v2583_v0 = vand.u32 4294901760, %v2582_v31  ;;  %v5703_v20 = vand.u32 4294901760, %v5004_v4 }
 0x3e8   : > { %v2588_v29 = vsub.f32 %v4982_v37, %v5701_v39  ;;  %v2606_v42 = vsub.f32 %v4978_v50, %v5702_v27  ;;  %3720 = vmatprep.subr.bf16.mxu1 %v4906_v9  ;;  %v3651_v15 = vpack.c.bf16 %v2577_v56, %v2565_v57  ;;  %v2601_v11 = vand.u32 4294901760, %v2600_v46 }
 0x3e9   : > { %2515 = vmatmul.mubr.f32.vlgmr.msra.gmra.mrb[6].mxu0 %v5703_v20  ;;  %v5704_v39 = vand.u32 4294901760, %v5008_v53  ;;  %v2530_v18 = vand.u32 4294901760, %v2529_v19  ;;  %v5705_v30 = vand.u32 4294901760, %v4987_v59  ;;  %v5605_v43 = vand.u32 4294901760, %v5019_v23 }
 0x3ea   : > { %3650 = vmatpush1.bf16.msra.mxu0 %v3649_v41  ;;  %2939 = vmatmul.mubr.f32.vlgmr.msra.gmra.mrb[6].mxu1 %v4913_v24  ;;  %v2571_v31 = vand.u32 4294901760, %v2570_v22  ;;  %v2589_v56 = vand.u32 4294901760, %v2588_v29  ;;  %v5706_v4 = vand.u32 4294901760, %v5017_v58  ;;  %v5707_v19 = vand.u32 4294901760, %v5010_v16 }
 0x3eb   : > { %v2624_v5 = vsub.f32 %v5008_v53, %v5704_v39  ;;  %v2594_v27 = vsub.f32 %v4987_v59, %v5705_v30  ;;  %3652 = vmatprep.subr.bf16.mxu0 %v3651_v15  ;;  %3722 = vmatpush1.bf16.msra.mxu1 %v4901_v44  ;;  %v2607_v1 = vand.u32 4294901760, %v2606_v42  ;;  %v5601_v22 = vand.u32 4294901760, %v5110_v61 }
 0x3ec   : > { %v2612_v21 = vsub.f32 %v5017_v58, %v5706_v4  ;;  %v2630_v46 = vsub.f32 %v5010_v16, %v5707_v19  ;;  %3724 = vmatprep.subr.bf16.mxu1 %v4973_v34  ;;  %v3653_v30 = vpack.c.bf16 %v2583_v0, %v2571_v31  ;;  %2525 = vmatprep.mubr.f32.mxu0 %v2524_v10  ;;  %v5604_v10 = vand.u32 4294901760, %v5094_v40  ;;  %v5708_v0 = vld [vmem:[#allocation10_spill] sm:$0xff]  ;;  %v5709_v31 = vld [vmem:[#allocation25_spill] sm:$0xff] }
 0x3ed   : > { %v3655_v41 = vpack.c.bf16 %v2601_v11, %v2589_v56  ;;  %v2625_v57 = vand.u32 4294901760, %v2624_v5  ;;  %2531 = vmatmul.mubr.f32.gmra.mrb[8].mxu0 %v2530_v18  ;;  %2946 = vmatprep.mubr.f32.mxu1 %v5050_v38  ;;  %v2618_v29 = vsub.f32 %v5019_v23, %v5605_v43  ;;  %v2595_v20 = vand.u32 4294901760, %v2594_v27  ;;  %v5711_v19 = vld [vmem:[#allocation30_spill] sm:$0xff] }
 0x3ee   : > { %3654 = vmatpush1.bf16.msra.mxu0 %v3653_v30  ;;  %2782 = vmatprep.mubr.f32.mxu0 %v4849_v33  ;;  %v2613_v42 = vand.u32 4294901760, %v2612_v21  ;;  %v5600_v5 = vand.u32 4294901760, %v5113_v54  ;;  %v2631_v11 = vand.u32 4294901760, %v2630_v46  ;;  %v2672_v18 = vsub.f32 %v5110_v61, %v5601_v22 }
 0x3ef   : > { %3656 = vmatprep.subr.bf16.mxu0 %v3655_v41  ;;  %3726 = vmatpush1.bf16.msra.mxu1 %v4967_v26  ;;  %v3657_v15 = vpack.c.bf16 %v2607_v1, %v2595_v20  ;;  %v5602_v27 = vand.u32 4294901760, %v5130_v52  ;;  %v5710_v56 = vand.u32 4294901760, %v5709_v31  ;;  %v5603_v4 = vand.u32 4294901760, %v5096_v32 }
 0x3f0   : > { %3728 = vmatprep.subr.bf16.mxu1 %v5708_v0  ;;  %2949 = vmatmul.mubr.f32.gmra.mrb[8].mxu1 %v5055_v63  ;;  %v3659_v39 = vpack.c.bf16 %v2625_v57, %v2613_v42  ;;  %v2619_v21 = vand.u32 4294901760, %v2618_v29  ;;  %v2660_v46 = vsub.f32 %v5094_v40, %v5604_v10  ;;  %v5606_v30 = vand.u32 4294901760, %v5124_v51  ;;  %v5712_v57 = vld [vmem:[#allocation34_spill] sm:$0xff] }
 0x3f1   : > { %3058 = vmatprep.mubr.f32.mxu1 %v5710_v56  ;;  %v2678_v1 = vsub.f32 %v5113_v54, %v5600_v5  ;;  %v5607_v41 = vand.u32 4294901760, %v5134_v25  ;;  %v2673_v42 = vand.u32 4294901760, %v2672_v18  ;;  %v2696_v29 = vsub.f32 %v5130_v52, %v5602_v27  ;;  %v5713_v56 = vld [vmem:[#allocation24_spill] sm:$0xff] }
 0x3f2   : > { %3658 = vmatpush1.bf16.msra.mxu0 %v3657_v15  ;;  %v3661_v20 = vpack.c.bf16 %v2631_v11, %v2619_v21  ;;  %v5608_v15 = vand.u32 4294901760, %v5141_v55  ;;  %v5609_v31 = vand.u32 4294901760, %v5115_v49  ;;  %v5714_v5 = vld [vmem:[#allocation32_spill] sm:$0xff]  ;;  %v2661_v22 = vand.u32 4294901760, %v2660_v46 }
 0x3f3   : > { %3660 = vmatprep.subr.bf16.mxu0 %v3659_v39  ;;  %3730 = vmatpush1.bf16.msra.mxu1 %v5711_v19  ;;  %v2666_v39 = vsub.f32 %v5096_v32, %v5603_v4  ;;  %v2684_v11 = vsub.f32 %v5124_v51, %v5606_v30  ;;  %v2702_v21 = vsub.f32 %v5134_v25, %v5607_v41  ;;  %v5715_v4 = vld [vmem:[#allocation20_spill] sm:$0xff]  ;;  %v5716_v41 = vld [vmem:[#allocation23_spill] sm:$0xff] }
 0x3f4   : > { %3732 = vmatprep.subr.bf16.mxu1 %v5712_v57  ;;  %v3667_v10 = vpack.c.bf16 %v2673_v42, %v2661_v22  ;;  %v2720_v46 = vsub.f32 %v5141_v55, %v5608_v15  ;;  %v2690_v30 = vsub.f32 %v5115_v49, %v5609_v31  ;;  %v5719_v15 = vand.u32 4294901760, %v5149_v17  ;;  %v5720_v18 = vld [vmem:[#allocation12_spill] sm:$0xff]  ;;  %v5723_v31 = vld [vmem:[#allocation11_spill] sm:$0xff] }
 0x3f5   : > { %v2667_v27 = vand.u32 4294901760, %v2666_v39  ;;  %v2685_v22 = vand.u32 4294901760, %v2684_v11  ;;  %v2703_v39 = vand.u32 4294901760, %v2702_v21  ;;  %v5721_v11 = vand.u32 4294901760, %v5192_v3 }
 0x3f6   : > { %3662 = vmatpush1.bf16.msra.mxu0 %v3661_v20  ;;  %v2679_v20 = vand.u32 4294901760, %v2678_v1  ;;  %v5718_v1 = vand.u32 4294901760, %v5159_v7  ;;  %v2726_v43 = vsub.f32 %v5149_v17, %v5719_v15  ;;  %v2737_v57 = vand.u32 4294901760, %v5209_v6 }
 0x3f7   : > { %3664 = vmatprep.subr.bf16.mxu0 %v5713_v56  ;;  %3734 = vmatpush1.bf16.msra.mxu1 %v5714_v5  ;;  %v2697_v56 = vand.u32 4294901760, %v2696_v29  ;;  %v2721_v5 = vand.u32 4294901760, %v2720_v46  ;;  %v2691_v15 = vand.u32 4294901760, %v2690_v30 }
 0x3f8   : > { %3736 = vmatprep.subr.bf16.mxu1 %v5715_v4  ;;  %v5717_v4 = vld [vmem:[#allocation19_spill] sm:$0xff]  ;;  %v2708_v42 = vsub.f32 %v5159_v7, %v5718_v1  ;;  %v5722_v1 = vand.u32 4294901760, %v5136_v36  ;;  %v2738_v30 = vsub.f32 %v5209_v6, %v2737_v57  ;;  %v5778_v6 = vld [vmem:[#allocation16_spill] sm:$0xff] }
 0x3f9   : > { %v3673_v46 = vpack.c.bf16 %v2703_v39, %v2691_v15  ;;  %v5729_v15 = vld [vmem:[#allocation8_spill] sm:$0xff] }
 0x3fa   : > { %3666 = vmatpush1.bf16.msra.mxu0 %v5716_v41  ;;  %v3669_v41 = vpack.c.bf16 %v2679_v20, %v2667_v27  ;;  %v2714_v29 = vsub.f32 %v5136_v36, %v5722_v1  ;;  %v5724_v27 = vand.u32 4294901760, %v5176_v35  ;;  %v5725_v20 = vand.u32 4294901760, %v5183_v60 }
 0x3fb   : > { %3668 = vmatprep.subr.bf16.mxu0 %v3667_v10  ;;  %3738 = vmatpush1.bf16.msra.mxu1 %v5717_v4  ;;  %v3671_v10 = vpack.c.bf16 %v2697_v56, %v2685_v22  ;;  %v2744_v4 = vsub.f32 %v5192_v3, %v5721_v11  ;;  %v2727_v22 = vand.u32 4294901760, %v2726_v43  ;;  %v2739_v39 = vand.u32 4294901760, %v2738_v30  ;;  %v5735_v30 = vld [vmem:[#allocation28_spill] sm:$0xff] }
 0x3fc   : > { %3740 = vmatprep.subr.bf16.mxu1 %v5720_v18  ;;  %v2709_v18 = vand.u32 4294901760, %v2708_v42  ;;  %v2732_v21 = vsub.f32 %v5176_v35, %v5724_v27  ;;  %v2750_v56 = vsub.f32 %v5183_v60, %v5725_v20  ;;  %v2715_v42 = vand.u32 4294901760, %v2714_v29  ;;  %v5728_v29 = vld [vmem:[#allocation26_spill] sm:$0xff] }
 0x3fd   : > { %v2745_v1 = vand.u32 4294901760, %v2744_v4  ;;  %v5727_v4 = vand.u32 4294901760, %v4908_v48 }
 0x3fe   : > { %3670 = vmatpush1.bf16.msra.mxu0 %v3669_v41  ;;  %v3675_v11 = vpack.c.bf16 %v2721_v5, %v2709_v18  ;;  %v2733_v41 = vand.u32 4294901760, %v2732_v21  ;;  %v2751_v27 = vand.u32 4294901760, %v2750_v56  ;;  %v5726_v5 = vand.u32 4294901760, %v4915_v14  ;;  %v5731_v56 = vld [vmem:[#allocation27_spill] sm:$0xff] }
 0x3ff   : > { %3672 = vmatprep.subr.bf16.mxu0 %v3671_v10  ;;  %3742 = vmatpush1.bf16.msra.mxu1 %v5723_v31  ;;  %v3677_v10 = vpack.c.bf16 %v2727_v22, %v2715_v42  ;;  %v5730_v21 = vand.u32 4294901760, %v5729_v15  ;;  %v5736_v14 = vand.u32 4294901760, %v5735_v30  ;;  %v5737_v42 = vld [vmem:[#allocation29_spill] sm:$0xff]  ;;  %v5746_v15 = vand.u32 4294901760, %v5055_v63 }
 0x400   : > { %3744 = vmatprep.subr.bf16.mxu1 %v5164_v2  ;;  %v3679_v20 = vpack.c.bf16 %v2745_v1, %v2733_v41  ;;  %v3681_v43 = vpack.c.bf16 %v2751_v27, %v2739_v39  ;;  %v3755_v18 = vpack.c.bf16 %v5727_v4, %v5726_v5  ;;  %v5734_v1 = vand.u32 4294901760, %v4913_v24  ;;  %v5740_v27 = vld [vmem:[#allocation33_spill] sm:$0xff] }
 0x401   : > { %v5738_v48 = vand.u32 4294901760, %v5737_v42  ;;  %v5742_v39 = vand.u32 4294901760, %v4952_v47  ;;  %v5743_v24 = vand.u32 4294901760, %v4982_v37  ;;  %v5744_v5 = vld [vmem:[#allocation9_spill] sm:$0xff]  ;;  %v5749_v47 = vand.u32 4294901760, %v5017_v58 }
 0x402   : > { %3674 = vmatpush1.bf16.msra.mxu0 %v3673_v46  ;;  %v5732_v46 = vand.u32 4294901760, %v5731_v56  ;;  %v5745_v4 = vand.u32 4294901760, %v5744_v5  ;;  %v5750_v56 = vand.u32 4294901760, %v5008_v53  ;;  %v5752_v63 = vand.u32 4294901760, %v5010_v16 }
 0x403   : > { %3676 = vmatprep.subr.bf16.mxu0 %v3675_v11  ;;  %3746 = vmatpush1.bf16.msra.mxu1 %v5127_v62  ;;  %v5733_v11 = vld [vmem:[#allocation31_spill] sm:$0xff]  ;;  %v3759_v41 = vpack.c.bf16 %v5738_v48, %v5736_v14  ;;  %v5756_v14 = vld [vmem:[#allocation21_spill] sm:$0xff]  ;;  %v5757_v53 = vand.u32 4294901760, %v5096_v32  ;;  %v5758_v58 = vand.u32 4294901760, %v5113_v54  ;;  %v5760_v16 = vand.u32 4294901760, %v5130_v52 }
 0x404   : > { %3748 = vmatprep.subr.bf16.mxu1 %v5172_v13  ;;  %v3757_v22 = vpack.c.bf16 %v5732_v46, %v5730_v21  ;;  %v5748_v21 = vand.u32 4294901760, %v4978_v50  ;;  %v3767_v37 = vpack.c.bf16 %v5750_v56, %v5749_v47  ;;  %v5751_v46 = vand.u32 4294901760, %v5019_v23 }
 0x405   : > { %v5755_v50 = vand.u32 4294901760, %v5110_v61  ;;  %v3777_v42 = vpack.c.bf16 %v5758_v58, %v5757_v53  ;;  %v5759_v23 = vand.u32 4294901760, %v5124_v51  ;;  %v5762_v61 = vand.u32 4294901760, %v5134_v25 }
 0x406   : > { %3678 = vmatpush1.bf16.msra.mxu0 %v3677_v10  ;;  %v5739_v10 = vand.u32 4294901760, %v5050_v38  ;;  %v5747_v38 = vand.u32 4294901760, %v4987_v59  ;;  %v5754_v59 = vand.u32 4294901760, %v5094_v40  ;;  %v5761_v40 = vand.u32 4294901760, %v5115_v49 }
 0x407   : > { %3680 = vmatprep.subr.bf16.mxu0 %v3679_v20  ;;  %3750 = vmatpush1.bf16.msra.mxu1 %v5161_v12  ;;  %v5741_v20 = vand.u32 4294901760, %v4950_v45  ;;  %v3779_v48 = vpack.c.bf16 %v5760_v16, %v5759_v23  ;;  %v5765_v54 = vand.u32 4294901760, %v5136_v36  ;;  %v5766_v51 = vand.u32 4294901760, %v5149_v17  ;;  %v5770_v36 = vld [vmem:[#allocation34_spill] sm:$0xff]  ;;  %v5772_v17 = vld [vmem:[#allocation20_spill] sm:$0xff] }
 0x408   : > { %3752 = vmatprep.subr.bf16.mxu1 %v5195_v8  ;;  %v3765_v45 = vpack.c.bf16 %v5748_v21, %v5747_v38  ;;  %v3775_v30 = vpack.c.bf16 %v5755_v50, %v5754_v59  ;;  %v5769_v25 = vand.u32 4294901760, %v5183_v60  ;;  %v5777_v60 = vld [vmem:[#allocation15_spill] sm:$0xff] }
 0x409   : > { %v3785_v52 = vpack.c.bf16 %v5766_v51, %v5765_v54 }
 0x40a   : > { %3682 = vmatpush1.bf16.msra.mxu0 %v3681_v43  ;;  %v3761_v43 = vpack.c.bf16 %v5742_v39, %v5741_v20  ;;  %v5764_v20 = vand.u32 4294901760, %v5141_v55  ;;  %v5767_v39 = vand.u32 4294901760, %v5176_v35  ;;  %v3789_v55 = vpack.c.bf16 %v5769_v25, %v2737_v57  ;;  %v3391_v57 = vpop.permute.xlu1 %3390 }
 0x40b   : > { %3754 = vmatpush1.bf16.msra.mxu1 %v5220_v28 }
 0x40c   : > { %3756 = vmatprep.subr.bf16.mxu1 %v3755_v18  ;;  %v3763_v18 = vpack.c.bf16 %v5745_v4, %v5743_v24 }
 0x40d   : > { %2784 = vmatmul.mubr.f32.vlgmr.msra.gmra.mrb[6].mxu0 %v5728_v29 }
 0x40e   : > { %2790 = vmatprep.mubr.f32.mxu0 %v5733_v11  ;;  %3062 = vmatmul.mubr.f32.vlgmr.msra.gmra.mrb[6].mxu1 %v5734_v1  ;;  %v5753_v1 = vld [vmem:[#allocation22_spill] sm:$0xff] }
 0x40f   : > { %3758 = vmatpush1.bf16.msra.mxu1 %v3757_v22  ;;  %3070 = vmatprep.mubr.f32.mxu1 %v5739_v10  ;;  %v3769_v22 = vpack.c.bf16 %v5752_v63, %v5751_v46  ;;  %v5763_v10 = vand.u32 4294901760, %v5159_v7  ;;  %v5774_v7 = vld [vmem:[#allocation12_spill] sm:$0xff] }
 0x410   : > { %3760 = vmatprep.subr.bf16.mxu1 %v3759_v41  ;;  %v3781_v41 = vpack.c.bf16 %v5762_v61, %v5761_v40 }
 0x411   : > { %2792 = vmatmul.mubr.f32.gmra.mrb[8].mxu0 %v5740_v27  ;;  %v3783_v32 = vpack.c.bf16 %v5764_v20, %v5763_v10 }
 0x412   : > { %3074 = vmatmul.mubr.f32.gmra.mrb[8].mxu1 %v5746_v15 }
 0x413   : > { %3762 = vmatpush1.bf16.msra.mxu1 %v3761_v43  ;;  %3253 = vmatprep.mubr.f32.mxu1 %v4849_v33  ;;  %v5768_v43 = vand.u32 4294901760, %v5192_v3 }
 0x414   : > { %3764 = vmatprep.subr.bf16.mxu1 %v3763_v18  ;;  %v3396_v18 = vpop.permute.xlu0 %3395 }
 0x415   : > { %v3787_v49 = vpack.c.bf16 %v5768_v43, %v5767_v39 }
 0x417   : > { %3766 = vmatpush1.bf16.msra.mxu1 %v3765_v45 }
 0x418   : > { %3768 = vmatprep.subr.bf16.mxu1 %v3767_v37 }
 0x41b   : > { %3770 = vmatpush1.bf16.msra.mxu1 %v3769_v22 }
 0x41c   : > { %3772 = vmatprep.subr.bf16.mxu1 %v5753_v1 }
 0x41f   : > { %3774 = vmatpush1.bf16.msra.mxu1 %v5756_v14 }
 0x420   : > { %3776 = vmatprep.subr.bf16.mxu1 %v3775_v30 }
 0x423   : > { %3778 = vmatpush1.bf16.msra.mxu1 %v3777_v42 }
 0x424   : > { %3780 = vmatprep.subr.bf16.mxu1 %v3779_v48 }
 0x427   : > { %3782 = vmatpush1.bf16.msra.mxu1 %v3781_v41 }
 0x428   : > { %3784 = vmatprep.subr.bf16.mxu1 %v3783_v32 }
 0x42b   : > { %3786 = vmatpush1.bf16.msra.mxu1 %v3785_v52 }
 0x42c   : > { %3788 = vmatprep.subr.bf16.mxu1 %v3787_v49 }
 0x42f   : > { %3790 = vmatpush1.bf16.msra.mxu1 %v3789_v55 }
 0x430   : > { %3792 = vmatprep.subr.bf16.mxu1 %v4906_v9  ;;  %v5771_v9 = vld [vmem:[#allocation32_spill] sm:$0xff] }
 0x432   : > { %3255 = vmatmul.mubr.f32.vlgmr.msra.gmra.mrb[6].mxu1 %v5728_v29 }
 0x433   : > { %3794 = vmatpush1.bf16.msra.mxu1 %v4901_v44  ;;  %3261 = vmatprep.mubr.f32.mxu1 %v5733_v11  ;;  %v5773_v44 = vld [vmem:[#allocation19_spill] sm:$0xff] }
 0x434   : > { %3796 = vmatprep.subr.bf16.mxu1 %v4973_v34 }
 0x436   : > { %3263 = vmatmul.mubr.f32.gmra.mrb[8].mxu1 %v5740_v27 }
 0x437   : > { %3798 = vmatpush1.bf16.msra.mxu1 %v4967_v26  ;;  %3370 = vmatprep.mubr.f32.mxu1 %v4849_v33  ;;  %v5775_v26 = vld [vmem:[#allocation13_spill] sm:$0xff] }
 0x438   : > { %3800 = vmatprep.subr.bf16.mxu1 %v5708_v0 }
 0x43b   : > { %3802 = vmatpush1.bf16.msra.mxu1 %v5711_v19 }
 0x43c   : > { %3804 = vmatprep.subr.bf16.mxu1 %v5770_v36 }
 0x43f   : > { %3806 = vmatpush1.bf16.msra.mxu1 %v5771_v9 }
 0x440   : > { %3808 = vmatprep.subr.bf16.mxu1 %v5772_v17 }
 0x443   : > { %3810 = vmatpush1.bf16.msra.mxu1 %v5773_v44 }
 0x444   : > { %3812 = vmatprep.subr.bf16.mxu1 %v5774_v7 }
 0x447   : > { %3814 = vmatpush1.bf16.msra.mxu1 %v5723_v31 }
 0x448   : > { %3816 = vmatprep.subr.bf16.mxu1 %v5164_v2 }
 0x44b   : > { %3818 = vmatpush1.bf16.msra.mxu1 %v5127_v62  ;;  %v5776_v62 = vld [vmem:[#allocation14_spill] sm:$0xff] }
 0x44c   : > { %3820 = vmatprep.subr.bf16.mxu1 %v5172_v13 }
 0x44f   : > { %3822 = vmatpush1.bf16.msra.mxu1 %v5161_v12 }
 0x450   : > { %3824 = vmatprep.subr.bf16.mxu1 %v5195_v8 }
 0x453   : > { %3826 = vmatpush1.bf16.msra.mxu1 %v5220_v28 }
 0x456   : > { %3372 = vmatmul.mubr.f32.vlgmr.msra.gmra.mrb[6].mxu1 %v5728_v29 }
 0x457   : > { %3378 = vmatprep.mubr.f32.mxu1 %v5733_v11 }
 0x45a   : > { %3380 = vmatmul.mubr.f32.gmra.mrb[8].mxu1 %v5740_v27 }
 0x4e0   : > { %v2785_v33 = vpop.f32.mrb[6].mxu0 }
 0x4e1   : > { %v3831_v34 = vadd.f32 %v2785_v33, %v5775_v26  ;;  %v2787_v2 = vpop.f32.mrb[7].mxu0 }
 0x4e2   : > { %v3833_v35 = vadd.f32 %v2787_v2, %v5776_v62 }
 0x4e4   : > { %v2793_v13 = vpop.f32.mrb[8].mxu0 }
 0x4e5   : > { %v3835_v3 = vadd.f32 %v2793_v13, %v5777_v60  ;;  %v2795_v12 = vpop.f32.mrb[9].mxu0 }
 0x4e6   : > { %v3837_v8 = vadd.f32 %v2795_v12, %v5778_v6 }
 0x529   : > { %v3373_v0 = vpop.f32.mrb[6].mxu1 }
 0x52a   : > { %v3832_v28 = vadd.f32 %v3831_v34, %v3373_v0  ;;  %v3375_v19 = vpop.f32.mrb[7].mxu1 }
 0x52b   : > { %v3834_v31 = vadd.f32 %v3833_v35, %v3375_v19 }
 0x52c   : > { %v3398_v29 = vadd.f32 %v3832_v28, %v3391_v57 }
 0x52d   : > { %v3399_v11 = vadd.f32 %v3834_v31, %v3391_v57  ;;  %v3381_v27 = vpop.f32.mrb[8].mxu1 }
 0x52e   : > { %v3402_v24 = vmax.f32 %v3398_v29, 0.0  ;;  %v3836_v5 = vadd.f32 %v3835_v3, %v3381_v27  ;;  %v3383_v4 = vpop.f32.mrb[9].mxu1 }
 0x52f   : > { %v3403_v15 = vmax.f32 %v3399_v11, 0.0  ;;  %v3838_v38 = vadd.f32 %v3837_v8, %v3383_v4 }
 0x530   : > { %3406 = vst [vmem:[%s348_s14] sm:$0xff] %v3402_v24  ;;  %v3400_v21 = vadd.f32 %v3836_v5, %v3396_v18 }
 0x531   : > { %3407 = vst [vmem:[%s348_s14 + $0x8] sm:$0xff] %v3403_v15  ;;  %v3401_v45 = vadd.f32 %v3838_v38, %v3396_v18 }
 0x532   : > { %v3404_v47 = vmax.f32 %v3400_v21, 0.0 }
 0x533   : > { %v3405_v56 = vmax.f32 %v3401_v45, 0.0 }
 0x534   : > { %3408 = vst [vmem:[%s348_s14 + $0x10] sm:$0xff] %v3404_v47 }
 0x535   : > { %3409 = vst [vmem:[%s348_s14 + $0x18] sm:$0xff] %v3405_v56 }
 0x536   : > { %4019 = shalt.err (!%p4016_p4)
}
 0x537   : > { %s4020_s14 = scalar_lea.hbm %s5475_s17, 512  ;;  %s4024_s16 = scalar_lea.hbm %s5529_s9, 1024 }
 0x538   : > { %p4021_p5 = scmp.ne.s32.totalorder %s5475_s17, %s4020_s14  ;;  %p4025_p0 = scmp.lt.u32.totalorder %s5475_s17, %s5529_s9 }
 0x539   : > { %p4026_p1 = scmp.lt.u32.totalorder %s4024_s16, %s4020_s14  ;;  %p4028_p6 = scmp.lt.u32.totalorder %s4020_s14, %s5475_s17 }
 0x53a   : > { %p4022_p8 = pnand %p4021_p5, %p5779_p11 }
 0x53b   : > { %p4027_p3 = por %p4026_p1, %p4025_p0 }
 0x53c   : > { %p4023_p9 = pneg %p4022_p8 }
 0x53d   : > { %p4029_p12 = por %p4028_p6, %p4027_p3 }
 0x53f   : > { %p4030_p13 = pnand %p4029_p12, %p4023_p9 }
 0x541   : > { %4033 = shalt.err (!%p4030_p13)
}
 0x542   : > { %s4086_s13 = smov 256   ;;  %s4087_s28 = smov 512  }
 0x543   : > { %3909 = dma.vmem_to_hbm [thread:$0]  (%p5779_p11), %s5470_s25, 512, %s5475_s17, %s3411_s19, %s4086_s13, %s4087_s28, %s4077_s26  }
 0x544 PF: > { %s3439_s27 = sand.u32 1, %s4060_s30   ;;  %p5780_p7 = scmp.ne.s32.totalorder %s5613_s22, 0 }
 0x545   : > { %p5781_p10 = scmp.ge.s32.totalorder %s4072_s12, 2  ;;  %s3440_s14 = scalar_lea.sflag [#allocation4], %s3439_s27 }
 0x547   : > { %p3916_p2 = pnand %p5781_p10, %p5780_p7 }
 0x549   : > { %4055 = dma.done.wait (!%p3916_p2), %s3440_s14, 512  }
 0x54a   : > { %4057 = vsyncadd (!%p3916_p2), %s3440_s14, 4294966784  ;;  %p22_p4 = scmp.ge.s32.totalorder %s4163_s15, 4   ;;  %s5782_s30 = smov %s4064_s10 }
 0x54b   : > { %s5783_s10 = smov %s4068_s11  ;;  %s5784_s11 = smov %s4175_s18 }
 0x54c   : > { %s5785_s12 = smov %s4163_s15  ;;  %24 = sbr.rel (!%p22_p4) target bundleno = 5 (0x5), region = 101 }
 0x553   :  { %3445 = vsyncpa [#allocation3], 1 }
 0x554   :  { %3447 = vsyncpa [#allocation3 + $0x1], 1 }
 0x555   :  { %3448 = vsyncpa [#allocation4], 1 }
 0x556   :  { %3450 = vsyncpa [#allocation4 + $0x1], 1 }

</bundles_post_ra>
